<compile_context>
chip_gen: v7x
topology: tpu7x:2x2x1
jax: 0.10.0
libtpu: 0.0.40
codegen_flags: <defaults>
</compile_context>

<pallas_src>
import functools

import jax
import jax.numpy as jnp
from jax.experimental import pallas as pl
from jax.experimental.pallas import tpu as pltpu


# ---------------------------------------------------------------------------
# Pallas kernel: (embedding+features)-folded fc1 + [fc->BN(eval)->Swish] x4 + fc5
# ---------------------------------------------------------------------------
def _fused_mlp_kernel(ids_ref, ratio_ref, add_ref,
                      w1_ref, t1_ref,
                      w2_ref, t2_ref,
                      w3_ref, t3_ref,
                      w4_ref, t4_ref,
                      w5_ref, b5_ref,
                      o_ref, *, num_elements, act_bf16):
    tm = ids_ref.shape[0]
    k1 = w1_ref.shape[0]                 # round_up(5*NE + F_add, 128)
    f_add = add_ref.shape[1]
    ne = num_elements

    ids = ids_ref[...]                   # [TM, 5] int32
    ratios = ratio_ref[...]              # [TM, 5] f32
    add = add_ref[...]                   # [TM, F_add] f32

    # Single fc1 operand: lanes [j*NE + ids[b,j]] = ratios[b,j]; lanes [5*NE + f] = add[b,f].
    lane = jax.lax.broadcasted_iota(jnp.int32, (tm, k1), 1)
    x = jnp.zeros((tm, k1), jnp.float32)
    for j in range(5):                                   # 5 cheap VPU selects
        x = x + jnp.where(lane == ids[:, j:j + 1] + j * ne,
                          ratios[:, j:j + 1], 0.0)
    base = 5 * ne
    for f in range(f_add):                               # F_add cheap VPU selects
        x = x + jnp.where(lane == base + f, add[:, f:f + 1], 0.0)

    def swish_to_bf16(z):
        # Swish; returns bf16 so it is directly the operand of the next matmul.
        if act_bf16:                     # v6e/v7x: bf16 VPU/EUP -> halve vreg traffic
            zb = z.astype(jnp.bfloat16)
            return zb * jax.nn.sigmoid(zb)
        return (z * jax.nn.sigmoid(z)).astype(jnp.bfloat16)   # v5e: f32 elementwise

    # fc1 (embedding + features folded) + folded BN + Swish.  dropout1: identity (eval).
    h = jnp.dot(x.astype(jnp.bfloat16), w1_ref[...],
                preferred_element_type=jnp.float32) + t1_ref[...]
    h = swish_to_bf16(h)

    # fc2..fc4 + folded BN + Swish.  dropout2/3: identity (eval).
    for w_ref, t_ref in ((w2_ref, t2_ref), (w3_ref, t3_ref), (w4_ref, t4_ref)):
        z = jnp.dot(h, w_ref[...], preferred_element_type=jnp.float32) + t_ref[...]
        h = swish_to_bf16(z)

    # fc5 has a single real output column -> broadcast-multiply + lane reduction
    # instead of a 128-wide padded matmul; (TM, 1) block written to a (B, 1) output.
    y = jnp.sum(h.astype(jnp.float32) * w5_ref[...], axis=-1, keepdims=True) + b5_ref[...]
    o_ref[...] = y.astype(o_ref.dtype)


# ---------------------------------------------------------------------------
# One-time parameter preparation (BN fold, embedding fold, merge, pad, bf16 cast)
# ---------------------------------------------------------------------------
def _round_up(n, m):
    return ((n + m - 1) // m) * m


def _pad_axis(x, axis, target):
    pad = target - x.shape[axis]
    if pad == 0:
        return x
    widths = [(0, 0)] * x.ndim
    widths[axis] = (0, pad)
    return jnp.pad(x, widths)


def prepare_params(params, lane_mult=128):
    """Fold BN into weights, fold embedding+features into one fc1 weight, pad lane-dense."""
    emb = params["embedding"]                       # [NE, E]
    ne, e = emb.shape

    def fold(i):
        w = params[f"fc{i}"]["w"]                   # [in, out]
        b = params[f"fc{i}"]["b"]
        bn = params[f"bn{i}"]
        inv = bn["gamma"] / jnp.sqrt(bn["var"] + 1e-5)
        return w * inv[None, :], (b * inv + bn["beta"] - bn["mean"] * inv)[None, :]

    w1, t1 = fold(1)
    w2, t2 = fold(2)
    w3, t3 = fold(3)
    w4, t4 = fold(4)
    w5 = params["fc5"]["w"]                         # [H4, 1]
    b5 = params["fc5"]["b"].reshape(1, 1)           # fc5 has no BN

    d_emb = 5 * e
    w1_emb, w1_add = w1[:d_emb], w1[d_emb:]
    # Wemb[j*NE + n, :] = emb[n, :] @ W1'[j*E:(j+1)*E, :]  (padding_idx row of emb is 0)
    wemb = jnp.einsum("ne,jeh->jnh", emb,
                      w1_emb.reshape(5, e, -1)).reshape(5 * ne, -1)
    w1m = jnp.concatenate([wemb, w1_add], axis=0)   # [5*NE + F_add, H1] merged fc1

    k1 = _round_up(w1m.shape[0], lane_mult)
    h1p = _round_up(w1.shape[1], lane_mult)
    h2p = _round_up(w2.shape[1], lane_mult)
    h3p = _round_up(w3.shape[1], lane_mult)
    h4p = _round_up(w4.shape[1], lane_mult)

    def pad_w(w, rows, cols):
        return _pad_axis(_pad_axis(w, 0, rows), 1, cols).astype(jnp.bfloat16)

    def pad_t(t, cols):
        return _pad_axis(t, 1, cols).astype(jnp.float32)

    return dict(
        w1=pad_w(w1m, k1, h1p), t1=pad_t(t1, h1p),
        w2=pad_w(w2, h1p, h2p), t2=pad_t(t2, h2p),
        w3=pad_w(w3, h2p, h3p), t3=pad_t(t3, h3p),
        w4=pad_w(w4, h3p, h4p), t4=pad_t(t4, h4p),
        w5=_pad_axis(w5.T, 1, h4p).astype(jnp.float32),   # [1, H4p] f32 row (reduce in f32)
        b5=b5.astype(jnp.float32),                        # [1, 1]
    )


_WEIGHT_ORDER = ("w1", "t1", "w2", "t2", "w3", "t3", "w4", "t4", "w5", "b5")


def _bf16_elementwise_supported():
    """bf16 Swish only on chips with bf16 VPU/EUP (v6e/v7x); f32 on v5e and older."""
    try:
        kind = jax.devices()[0].device_kind.lower()
    except Exception:
        return False
    return not any(t in kind for t in ("v2", "v3", "v4", "v5"))


# ---------------------------------------------------------------------------
# Forward pass (eval mode)
# ---------------------------------------------------------------------------
@functools.partial(jax.jit, static_argnames=("num_elements", "tm", "act_bf16"))
def _forward_impl(element_ids, element_ratios, additional_features, prepared,
                  *, num_elements, tm, act_bf16):
    b = element_ids.shape[0]
    f_add = additional_features.shape[1]
    # Tuned default tm=1024 (sweep 512-2048); shrink for tiny batches so there is no
    # wasted work.  Ragged tails are handled by Pallas' partial last block (no pad).
    tm_eff = max(8, min(tm, _round_up(b, 8)))
    grid = (pl.cdiv(b, tm_eff),)

    weights = [prepared[k] for k in _WEIGHT_ORDER]

    def row_spec(cols):
        return pl.BlockSpec((tm_eff, cols), lambda i: (i, 0))

    def weight_spec(arr):
        # Full array, constant index map, single buffer: VMEM-resident constants.
        return pl.BlockSpec(arr.shape, lambda i: (0, 0),
                            pipeline_mode=pl.Buffered(1))

    kernel = functools.partial(_fused_mlp_kernel,
                               num_elements=num_elements, act_bf16=act_bf16)

    return pl.pallas_call(
        kernel,
        out_shape=jax.ShapeDtypeStruct((b, 1), jnp.float32),
        grid=grid,
        in_specs=[row_spec(5), row_spec(5), row_spec(f_add)]
                 + [weight_spec(w) for w in weights],
        out_specs=pl.BlockSpec((tm_eff, 1), lambda i: (i, 0)),
        compiler_params=pltpu.CompilerParams(
            dimension_semantics=("parallel",)),
    )(element_ids.astype(jnp.int32), element_ratios, additional_features, *weights)


def extended_alloy_forward(element_ids, element_ratios, additional_features,
                           prepared, num_elements, tm=1024):
    """element_ids int [B,5], element_ratios f32 [B,5], additional_features f32 [B,F]."""
    return _forward_impl(element_ids, element_ratios, additional_features, prepared,
                         num_elements=num_elements, tm=tm,
                         act_bf16=_bf16_elementwise_supported())


# ---------------------------------------------------------------------------
# Pure-JAX f32 reference (mirrors the PyTorch module in eval mode)
# ---------------------------------------------------------------------------
def reference_forward(element_ids, element_ratios, additional_features, params):
    emb = params["embedding"]
    embeds = jnp.take(emb, element_ids, axis=0)
    combined = embeds * element_ratios[..., None]
    x = jnp.concatenate([combined.reshape(combined.shape[0], -1),
                         additional_features], axis=1)

    def bn(z, p):
        inv = p["gamma"] / jnp.sqrt(p["var"] + 1e-5)
        return (z - p["mean"]) * inv + p["beta"]

    h = x
    for i in (1, 2, 3, 4):
        z = h @ params[f"fc{i}"]["w"] + params[f"fc{i}"]["b"]
        z = bn(z, params[f"bn{i}"])
        h = z * jax.nn.sigmoid(z)
    return h @ params["fc5"]["w"] + params["fc5"]["b"]


# ---------------------------------------------------------------------------
# Deterministic parameter construction (synthetic, not a checkpoint load)
# ---------------------------------------------------------------------------
def make_params(key, num_elements, embedding_dim, additional_features_dim,
                padding_value, num_neurons=(267, 178, 290, 98)):
    keys = jax.random.split(key, 16)
    ki = iter(range(16))

    emb = jax.random.normal(keys[next(ki)], (num_elements, embedding_dim),
                            jnp.float32) * 0.1
    emb = emb.at[padding_value].set(0.0)            # nn.Embedding padding_idx

    dims = [embedding_dim * 5 + additional_features_dim] + list(num_neurons) + [1]

    params = {"embedding": emb}
    for i in range(5):
        fan_in, fan_out = dims[i], dims[i + 1]
        bound = 1.0 / jnp.sqrt(fan_in)
        w = jax.random.uniform(keys[next(ki)], (fan_in, fan_out), jnp.float32,
                               -bound, bound)
        b = jax.random.uniform(keys[next(ki)], (fan_out,), jnp.float32,
                               -bound, bound)
        params[f"fc{i + 1}"] = {"w": w, "b": b}
        if i < 4:
            params[f"bn{i + 1}"] = {
                "gamma": jnp.full((fan_out,), 1.0, jnp.float32)
                         + 0.01 * jnp.arange(fan_out, dtype=jnp.float32) / fan_out,
                "beta": jnp.full((fan_out,), 0.05, jnp.float32),
                "mean": jnp.full((fan_out,), 0.02, jnp.float32),
                "var": jnp.full((fan_out,), 1.1, jnp.float32),
            }
    return params


# ---------------------------------------------------------------------------
if __name__ == "__main__":
    NUM_ELEMENTS = 20
    EMBEDDING_DIM = 16
    ADDITIONAL_FEATURES_DIM = 8
    PADDING_VALUE = 0

    root = jax.random.PRNGKey(0)
    k_params = jax.random.split(root, 2)[0]

    params = make_params(k_params, NUM_ELEMENTS, EMBEDDING_DIM,
                         ADDITIONAL_FEATURES_DIM, PADDING_VALUE)
    prepared = prepare_params(params)               # one-time folding / padding

    def make_inputs(batch, key):
        k_ids, k_ratio, k_add = jax.random.split(key, 3)
        ids = jax.random.randint(k_ids, (batch, 5), 0, NUM_ELEMENTS, jnp.int32)
        ids = ids.at[0, 4].set(PADDING_VALUE)       # exercise padding_idx
        ratios = jax.random.uniform(k_ratio, (batch, 5), jnp.float32)
        ratios = ratios / jnp.sum(ratios, axis=1, keepdims=True)
        add = jax.random.normal(k_add, (batch, ADDITIONAL_FEATURES_DIM), jnp.float32)
        return ids, ratios, add

    # Case 1: small batch, single tile.
    ids, ratios, add = make_inputs(8, jax.random.PRNGKey(1))
    out = jax.block_until_ready(
        extended_alloy_forward(ids, ratios, add, prepared, NUM_ELEMENTS))
    assert out.shape == (8, 1) and out.dtype == jnp.float32
    assert bool(jnp.all(jnp.isfinite(out)))
    ref = reference_forward(ids, ratios, add, params)
    assert bool(jnp.allclose(out, ref, rtol=5e-2, atol=5e-2))

    # Case 2: multi-tile batch with a ragged tail (no wrapper pad, partial last block).
    ids2, ratios2, add2 = make_inputs(300, jax.random.PRNGKey(2))
    out2 = jax.block_until_ready(
        extended_alloy_forward(ids2, ratios2, add2, prepared, NUM_ELEMENTS, tm=128))
    assert out2.shape == (300, 1)
    assert bool(jnp.all(jnp.isfinite(out2)))
    ref2 = reference_forward(ids2, ratios2, add2, params)
    assert bool(jnp.allclose(out2, ref2, rtol=5e-2, atol=5e-2))

    print("KERNEL_OK")
</pallas_src>

<mosaic_0001>
module attributes {stable_mosaic.version = 11 : i64} {
  func.func @_fused_mlp_kernel(%arg0: i32, %arg1: memref<8x5xi32, #tpu.memory_space<vmem>>, %arg2: memref<8x5xf32, #tpu.memory_space<vmem>>, %arg3: memref<8x8xf32, #tpu.memory_space<vmem>>, %arg4: memref<128x384xbf16, #tpu.memory_space<vmem>>, %arg5: memref<1x384xf32, #tpu.memory_space<vmem>>, %arg6: memref<384x256xbf16, #tpu.memory_space<vmem>>, %arg7: memref<1x256xf32, #tpu.memory_space<vmem>>, %arg8: memref<256x384xbf16, #tpu.memory_space<vmem>>, %arg9: memref<1x384xf32, #tpu.memory_space<vmem>>, %arg10: memref<384x128xbf16, #tpu.memory_space<vmem>>, %arg11: memref<1x128xf32, #tpu.memory_space<vmem>>, %arg12: memref<1x128xf32, #tpu.memory_space<vmem>>, %arg13: memref<1x1xf32, #tpu.memory_space<vmem>>, %arg14: memref<8x1xf32, #tpu.memory_space<vmem>>) attributes {dimension_semantics = [#tpu.dimension_semantics<parallel>], iteration_bounds = array<i64: 1>, scalar_prefetch = 0 : i64, scratch_operands = 0 : i64, tpu.core_type = #tpu.core_type<tc>, window_params = [{transform_indices = @transform_0, window_bounds = array<i64: 8, 5>}, {transform_indices = @transform_1, window_bounds = array<i64: 8, 5>}, {transform_indices = @transform_2, window_bounds = array<i64: 8, 8>}, {pipeline_mode = #tpu.pipeline_mode<synchronous>, transform_indices = @transform_3, window_bounds = array<i64: 128, 384>}, {pipeline_mode = #tpu.pipeline_mode<synchronous>, transform_indices = @transform_4, window_bounds = array<i64: 1, 384>}, {pipeline_mode = #tpu.pipeline_mode<synchronous>, transform_indices = @transform_5, window_bounds = array<i64: 384, 256>}, {pipeline_mode = #tpu.pipeline_mode<synchronous>, transform_indices = @transform_6, window_bounds = array<i64: 1, 256>}, {pipeline_mode = #tpu.pipeline_mode<synchronous>, transform_indices = @transform_7, window_bounds = array<i64: 256, 384>}, {pipeline_mode = #tpu.pipeline_mode<synchronous>, transform_indices = @transform_8, window_bounds = array<i64: 1, 384>}, {pipeline_mode = #tpu.pipeline_mode<synchronous>, transform_indices = @transform_9, window_bounds = array<i64: 384, 128>}, {pipeline_mode = #tpu.pipeline_mode<synchronous>, transform_indices = @transform_10, window_bounds = array<i64: 1, 128>}, {pipeline_mode = #tpu.pipeline_mode<synchronous>, transform_indices = @transform_11, window_bounds = array<i64: 1, 128>}, {pipeline_mode = #tpu.pipeline_mode<synchronous>, transform_indices = @transform_12, window_bounds = array<i64: 1, 1>}, {transform_indices = @transform_13, window_bounds = array<i64: 8, 1>}]} {
    %c0 = arith.constant 0 : index
    %c0_0 = arith.constant 0 : index
    %0 = vector.load %arg1[%c0, %c0_0] : memref<8x5xi32, #tpu.memory_space<vmem>>, vector<8x5xi32>
    %c0_1 = arith.constant 0 : index
    %c0_2 = arith.constant 0 : index
    %1 = vector.load %arg2[%c0_1, %c0_2] : memref<8x5xf32, #tpu.memory_space<vmem>>, vector<8x5xf32>
    %c0_3 = arith.constant 0 : index
    %c0_4 = arith.constant 0 : index
    %2 = vector.load %arg3[%c0_3, %c0_4] : memref<8x8xf32, #tpu.memory_space<vmem>>, vector<8x8xf32>
    %3 = tpu.iota {dimensions = array<i32: 1>} : vector<8x128xi32>
    %cst = arith.constant 0.000000e+00 : f32
    %4 = vector.broadcast %cst : f32 to vector<8x128xf32>
    %5 = vector.extract_strided_slice %0 {offsets = [0, 0], sizes = [8, 1], strides = [1, 1]} : vector<8x5xi32> to vector<8x1xi32>
    %c0_i32 = arith.constant 0 : i32
    %6 = vector.broadcast %c0_i32 : i32 to vector<8x1xi32>
    %7 = arith.addi %5, %6 : vector<8x1xi32>
    %8 = vector.broadcast %7 : vector<8x1xi32> to vector<8x128xi32>
    %9 = arith.cmpi eq, %3, %8 : vector<8x128xi32>
    %10 = vector.extract_strided_slice %1 {offsets = [0, 0], sizes = [8, 1], strides = [1, 1]} : vector<8x5xf32> to vector<8x1xf32>
    %cst_5 = arith.constant 0.000000e+00 : f32
    %11 = vector.shape_cast %10 : vector<8x1xf32> to vector<8x1xf32>
    %12 = vector.broadcast %11 : vector<8x1xf32> to vector<8x128xf32>
    %13 = vector.broadcast %cst_5 : f32 to vector<8x128xf32>
    %14 = arith.select %9, %12, %13 : vector<8x128xi1>, vector<8x128xf32>
    %15 = arith.addf %4, %14 : vector<8x128xf32>
    %16 = vector.extract_strided_slice %0 {offsets = [0, 1], sizes = [8, 1], strides = [1, 1]} : vector<8x5xi32> to vector<8x1xi32>
    %c20_i32 = arith.constant 20 : i32
    %17 = vector.broadcast %c20_i32 : i32 to vector<8x1xi32>
    %18 = arith.addi %16, %17 : vector<8x1xi32>
    %19 = vector.broadcast %18 : vector<8x1xi32> to vector<8x128xi32>
    %20 = arith.cmpi eq, %3, %19 : vector<8x128xi32>
    %21 = vector.extract_strided_slice %1 {offsets = [0, 1], sizes = [8, 1], strides = [1, 1]} : vector<8x5xf32> to vector<8x1xf32>
    %cst_6 = arith.constant 0.000000e+00 : f32
    %22 = vector.shape_cast %21 : vector<8x1xf32> to vector<8x1xf32>
    %23 = vector.broadcast %22 : vector<8x1xf32> to vector<8x128xf32>
    %24 = vector.broadcast %cst_6 : f32 to vector<8x128xf32>
    %25 = arith.select %20, %23, %24 : vector<8x128xi1>, vector<8x128xf32>
    %26 = arith.addf %15, %25 : vector<8x128xf32>
    %27 = vector.extract_strided_slice %0 {offsets = [0, 2], sizes = [8, 1], strides = [1, 1]} : vector<8x5xi32> to vector<8x1xi32>
    %c40_i32 = arith.constant 40 : i32
    %28 = vector.broadcast %c40_i32 : i32 to vector<8x1xi32>
    %29 = arith.addi %27, %28 : vector<8x1xi32>
    %30 = vector.broadcast %29 : vector<8x1xi32> to vector<8x128xi32>
    %31 = arith.cmpi eq, %3, %30 : vector<8x128xi32>
    %32 = vector.extract_strided_slice %1 {offsets = [0, 2], sizes = [8, 1], strides = [1, 1]} : vector<8x5xf32> to vector<8x1xf32>
    %cst_7 = arith.constant 0.000000e+00 : f32
    %33 = vector.shape_cast %32 : vector<8x1xf32> to vector<8x1xf32>
    %34 = vector.broadcast %33 : vector<8x1xf32> to vector<8x128xf32>
    %35 = vector.broadcast %cst_7 : f32 to vector<8x128xf32>
    %36 = arith.select %31, %34, %35 : vector<8x128xi1>, vector<8x128xf32>
    %37 = arith.addf %26, %36 : vector<8x128xf32>
    %38 = vector.extract_strided_slice %0 {offsets = [0, 3], sizes = [8, 1], strides = [1, 1]} : vector<8x5xi32> to vector<8x1xi32>
    %c60_i32 = arith.constant 60 : i32
    %39 = vector.broadcast %c60_i32 : i32 to vector<8x1xi32>
    %40 = arith.addi %38, %39 : vector<8x1xi32>
    %41 = vector.broadcast %40 : vector<8x1xi32> to vector<8x128xi32>
    %42 = arith.cmpi eq, %3, %41 : vector<8x128xi32>
    %43 = vector.extract_strided_slice %1 {offsets = [0, 3], sizes = [8, 1], strides = [1, 1]} : vector<8x5xf32> to vector<8x1xf32>
    %cst_8 = arith.constant 0.000000e+00 : f32
    %44 = vector.shape_cast %43 : vector<8x1xf32> to vector<8x1xf32>
    %45 = vector.broadcast %44 : vector<8x1xf32> to vector<8x128xf32>
    %46 = vector.broadcast %cst_8 : f32 to vector<8x128xf32>
    %47 = arith.select %42, %45, %46 : vector<8x128xi1>, vector<8x128xf32>
    %48 = arith.addf %37, %47 : vector<8x128xf32>
    %49 = vector.extract_strided_slice %0 {offsets = [0, 4], sizes = [8, 1], strides = [1, 1]} : vector<8x5xi32> to vector<8x1xi32>
    %c80_i32 = arith.constant 80 : i32
    %50 = vector.broadcast %c80_i32 : i32 to vector<8x1xi32>
    %51 = arith.addi %49, %50 : vector<8x1xi32>
    %52 = vector.broadcast %51 : vector<8x1xi32> to vector<8x128xi32>
    %53 = arith.cmpi eq, %3, %52 : vector<8x128xi32>
    %54 = vector.extract_strided_slice %1 {offsets = [0, 4], sizes = [8, 1], strides = [1, 1]} : vector<8x5xf32> to vector<8x1xf32>
    %cst_9 = arith.constant 0.000000e+00 : f32
    %55 = vector.shape_cast %54 : vector<8x1xf32> to vector<8x1xf32>
    %56 = vector.broadcast %55 : vector<8x1xf32> to vector<8x128xf32>
    %57 = vector.broadcast %cst_9 : f32 to vector<8x128xf32>
    %58 = arith.select %53, %56, %57 : vector<8x128xi1>, vector<8x128xf32>
    %59 = arith.addf %48, %58 : vector<8x128xf32>
    %c100_i32 = arith.constant 100 : i32
    %60 = vector.broadcast %c100_i32 : i32 to vector<8x128xi32>
    %61 = arith.cmpi eq, %3, %60 : vector<8x128xi32>
    %62 = vector.extract_strided_slice %2 {offsets = [0, 0], sizes = [8, 1], strides = [1, 1]} : vector<8x8xf32> to vector<8x1xf32>
    %cst_10 = arith.constant 0.000000e+00 : f32
    %63 = vector.shape_cast %62 : vector<8x1xf32> to vector<8x1xf32>
    %64 = vector.broadcast %63 : vector<8x1xf32> to vector<8x128xf32>
    %65 = vector.broadcast %cst_10 : f32 to vector<8x128xf32>
    %66 = arith.select %61, %64, %65 : vector<8x128xi1>, vector<8x128xf32>
    %67 = arith.addf %59, %66 : vector<8x128xf32>
    %c101_i32 = arith.constant 101 : i32
    %68 = vector.broadcast %c101_i32 : i32 to vector<8x128xi32>
    %69 = arith.cmpi eq, %3, %68 : vector<8x128xi32>
    %70 = vector.extract_strided_slice %2 {offsets = [0, 1], sizes = [8, 1], strides = [1, 1]} : vector<8x8xf32> to vector<8x1xf32>
    %cst_11 = arith.constant 0.000000e+00 : f32
    %71 = vector.shape_cast %70 : vector<8x1xf32> to vector<8x1xf32>
    %72 = vector.broadcast %71 : vector<8x1xf32> to vector<8x128xf32>
    %73 = vector.broadcast %cst_11 : f32 to vector<8x128xf32>
    %74 = arith.select %69, %72, %73 : vector<8x128xi1>, vector<8x128xf32>
    %75 = arith.addf %67, %74 : vector<8x128xf32>
    %c102_i32 = arith.constant 102 : i32
    %76 = vector.broadcast %c102_i32 : i32 to vector<8x128xi32>
    %77 = arith.cmpi eq, %3, %76 : vector<8x128xi32>
    %78 = vector.extract_strided_slice %2 {offsets = [0, 2], sizes = [8, 1], strides = [1, 1]} : vector<8x8xf32> to vector<8x1xf32>
    %cst_12 = arith.constant 0.000000e+00 : f32
    %79 = vector.shape_cast %78 : vector<8x1xf32> to vector<8x1xf32>
    %80 = vector.broadcast %79 : vector<8x1xf32> to vector<8x128xf32>
    %81 = vector.broadcast %cst_12 : f32 to vector<8x128xf32>
    %82 = arith.select %77, %80, %81 : vector<8x128xi1>, vector<8x128xf32>
    %83 = arith.addf %75, %82 : vector<8x128xf32>
    %c103_i32 = arith.constant 103 : i32
    %84 = vector.broadcast %c103_i32 : i32 to vector<8x128xi32>
    %85 = arith.cmpi eq, %3, %84 : vector<8x128xi32>
    %86 = vector.extract_strided_slice %2 {offsets = [0, 3], sizes = [8, 1], strides = [1, 1]} : vector<8x8xf32> to vector<8x1xf32>
    %cst_13 = arith.constant 0.000000e+00 : f32
    %87 = vector.shape_cast %86 : vector<8x1xf32> to vector<8x1xf32>
    %88 = vector.broadcast %87 : vector<8x1xf32> to vector<8x128xf32>
    %89 = vector.broadcast %cst_13 : f32 to vector<8x128xf32>
    %90 = arith.select %85, %88, %89 : vector<8x128xi1>, vector<8x128xf32>
    %91 = arith.addf %83, %90 : vector<8x128xf32>
    %c104_i32 = arith.constant 104 : i32
    %92 = vector.broadcast %c104_i32 : i32 to vector<8x128xi32>
    %93 = arith.cmpi eq, %3, %92 : vector<8x128xi32>
    %94 = vector.extract_strided_slice %2 {offsets = [0, 4], sizes = [8, 1], strides = [1, 1]} : vector<8x8xf32> to vector<8x1xf32>
    %cst_14 = arith.constant 0.000000e+00 : f32
    %95 = vector.shape_cast %94 : vector<8x1xf32> to vector<8x1xf32>
    %96 = vector.broadcast %95 : vector<8x1xf32> to vector<8x128xf32>
    %97 = vector.broadcast %cst_14 : f32 to vector<8x128xf32>
    %98 = arith.select %93, %96, %97 : vector<8x128xi1>, vector<8x128xf32>
    %99 = arith.addf %91, %98 : vector<8x128xf32>
    %c105_i32 = arith.constant 105 : i32
    %100 = vector.broadcast %c105_i32 : i32 to vector<8x128xi32>
    %101 = arith.cmpi eq, %3, %100 : vector<8x128xi32>
    %102 = vector.extract_strided_slice %2 {offsets = [0, 5], sizes = [8, 1], strides = [1, 1]} : vector<8x8xf32> to vector<8x1xf32>
    %cst_15 = arith.constant 0.000000e+00 : f32
    %103 = vector.shape_cast %102 : vector<8x1xf32> to vector<8x1xf32>
    %104 = vector.broadcast %103 : vector<8x1xf32> to vector<8x128xf32>
    %105 = vector.broadcast %cst_15 : f32 to vector<8x128xf32>
    %106 = arith.select %101, %104, %105 : vector<8x128xi1>, vector<8x128xf32>
    %107 = arith.addf %99, %106 : vector<8x128xf32>
    %c106_i32 = arith.constant 106 : i32
    %108 = vector.broadcast %c106_i32 : i32 to vector<8x128xi32>
    %109 = arith.cmpi eq, %3, %108 : vector<8x128xi32>
    %110 = vector.extract_strided_slice %2 {offsets = [0, 6], sizes = [8, 1], strides = [1, 1]} : vector<8x8xf32> to vector<8x1xf32>
    %cst_16 = arith.constant 0.000000e+00 : f32
    %111 = vector.shape_cast %110 : vector<8x1xf32> to vector<8x1xf32>
    %112 = vector.broadcast %111 : vector<8x1xf32> to vector<8x128xf32>
    %113 = vector.broadcast %cst_16 : f32 to vector<8x128xf32>
    %114 = arith.select %109, %112, %113 : vector<8x128xi1>, vector<8x128xf32>
    %115 = arith.addf %107, %114 : vector<8x128xf32>
    %c107_i32 = arith.constant 107 : i32
    %116 = vector.broadcast %c107_i32 : i32 to vector<8x128xi32>
    %117 = arith.cmpi eq, %3, %116 : vector<8x128xi32>
    %118 = vector.extract_strided_slice %2 {offsets = [0, 7], sizes = [8, 1], strides = [1, 1]} : vector<8x8xf32> to vector<8x1xf32>
    %cst_17 = arith.constant 0.000000e+00 : f32
    %119 = vector.shape_cast %118 : vector<8x1xf32> to vector<8x1xf32>
    %120 = vector.broadcast %119 : vector<8x1xf32> to vector<8x128xf32>
    %121 = vector.broadcast %cst_17 : f32 to vector<8x128xf32>
    %122 = arith.select %117, %120, %121 : vector<8x128xi1>, vector<8x128xf32>
    %123 = arith.addf %115, %122 : vector<8x128xf32>
    %124 = arith.truncf %123 : vector<8x128xf32> to vector<8x128xbf16>
    %c0_18 = arith.constant 0 : index
    %c0_19 = arith.constant 0 : index
    %125 = vector.load %arg4[%c0_18, %c0_19] : memref<128x384xbf16, #tpu.memory_space<vmem>>, vector<128x384xbf16>
    %cst_20 = arith.constant dense<0.000000e+00> : vector<8x384xf32>
    %126 = tpu.matmul %124, %125, %cst_20 {dimension_numbers = #tpu.dot_dimension_numbers<[1], [0], [0], [1], [0, 0, 1, 1], [], []>} : vector<8x128xbf16>, vector<128x384xbf16>, vector<8x384xf32> -> vector<8x384xf32>
    %c0_21 = arith.constant 0 : index
    %c0_22 = arith.constant 0 : index
    %127 = vector.load %arg5[%c0_21, %c0_22] : memref<1x384xf32, #tpu.memory_space<vmem>>, vector<1x384xf32>
    %128 = vector.broadcast %127 : vector<1x384xf32> to vector<8x384xf32>
    %129 = arith.addf %126, %128 : vector<8x384xf32>
    %130 = arith.truncf %129 : vector<8x384xf32> to vector<8x384xbf16>
    %131 = arith.negf %130 : vector<8x384xbf16>
    %132 = math.exp %131 : vector<8x384xbf16>
    %cst_23 = arith.constant 1.000000e+00 : bf16
    %133 = vector.broadcast %cst_23 : bf16 to vector<8x384xbf16>
    %134 = arith.addf %133, %132 : vector<8x384xbf16>
    %135 = arith.divf %133, %134 : vector<8x384xbf16>
    %136 = arith.mulf %130, %135 : vector<8x384xbf16>
    %c0_24 = arith.constant 0 : index
    %c0_25 = arith.constant 0 : index
    %137 = vector.load %arg6[%c0_24, %c0_25] : memref<384x256xbf16, #tpu.memory_space<vmem>>, vector<384x256xbf16>
    %cst_26 = arith.constant dense<0.000000e+00> : vector<8x256xf32>
    %138 = tpu.matmul %136, %137, %cst_26 {dimension_numbers = #tpu.dot_dimension_numbers<[1], [0], [0], [1], [0, 0, 1, 1], [], []>} : vector<8x384xbf16>, vector<384x256xbf16>, vector<8x256xf32> -> vector<8x256xf32>
    %c0_27 = arith.constant 0 : index
    %c0_28 = arith.constant 0 : index
    %139 = vector.load %arg7[%c0_27, %c0_28] : memref<1x256xf32, #tpu.memory_space<vmem>>, vector<1x256xf32>
    %140 = vector.broadcast %139 : vector<1x256xf32> to vector<8x256xf32>
    %141 = arith.addf %138, %140 : vector<8x256xf32>
    %142 = arith.truncf %141 : vector<8x256xf32> to vector<8x256xbf16>
    %143 = arith.negf %142 : vector<8x256xbf16>
    %144 = math.exp %143 : vector<8x256xbf16>
    %cst_29 = arith.constant 1.000000e+00 : bf16
    %145 = vector.broadcast %cst_29 : bf16 to vector<8x256xbf16>
    %146 = arith.addf %145, %144 : vector<8x256xbf16>
    %147 = arith.divf %145, %146 : vector<8x256xbf16>
    %148 = arith.mulf %142, %147 : vector<8x256xbf16>
    %c0_30 = arith.constant 0 : index
    %c0_31 = arith.constant 0 : index
    %149 = vector.load %arg8[%c0_30, %c0_31] : memref<256x384xbf16, #tpu.memory_space<vmem>>, vector<256x384xbf16>
    %cst_32 = arith.constant dense<0.000000e+00> : vector<8x384xf32>
    %150 = tpu.matmul %148, %149, %cst_32 {dimension_numbers = #tpu.dot_dimension_numbers<[1], [0], [0], [1], [0, 0, 1, 1], [], []>} : vector<8x256xbf16>, vector<256x384xbf16>, vector<8x384xf32> -> vector<8x384xf32>
    %c0_33 = arith.constant 0 : index
    %c0_34 = arith.constant 0 : index
    %151 = vector.load %arg9[%c0_33, %c0_34] : memref<1x384xf32, #tpu.memory_space<vmem>>, vector<1x384xf32>
    %152 = vector.broadcast %151 : vector<1x384xf32> to vector<8x384xf32>
    %153 = arith.addf %150, %152 : vector<8x384xf32>
    %154 = arith.truncf %153 : vector<8x384xf32> to vector<8x384xbf16>
    %155 = arith.negf %154 : vector<8x384xbf16>
    %156 = math.exp %155 : vector<8x384xbf16>
    %cst_35 = arith.constant 1.000000e+00 : bf16
    %157 = vector.broadcast %cst_35 : bf16 to vector<8x384xbf16>
    %158 = arith.addf %157, %156 : vector<8x384xbf16>
    %159 = arith.divf %157, %158 : vector<8x384xbf16>
    %160 = arith.mulf %154, %159 : vector<8x384xbf16>
    %c0_36 = arith.constant 0 : index
    %c0_37 = arith.constant 0 : index
    %161 = vector.load %arg10[%c0_36, %c0_37] : memref<384x128xbf16, #tpu.memory_space<vmem>>, vector<384x128xbf16>
    %cst_38 = arith.constant dense<0.000000e+00> : vector<8x128xf32>
    %162 = tpu.matmul %160, %161, %cst_38 {dimension_numbers = #tpu.dot_dimension_numbers<[1], [0], [0], [1], [0, 0, 1, 1], [], []>} : vector<8x384xbf16>, vector<384x128xbf16>, vector<8x128xf32> -> vector<8x128xf32>
    %c0_39 = arith.constant 0 : index
    %c0_40 = arith.constant 0 : index
    %163 = vector.load %arg11[%c0_39, %c0_40] : memref<1x128xf32, #tpu.memory_space<vmem>>, vector<1x128xf32>
    %164 = vector.broadcast %163 : vector<1x128xf32> to vector<8x128xf32>
    %165 = arith.addf %162, %164 : vector<8x128xf32>
    %166 = arith.truncf %165 : vector<8x128xf32> to vector<8x128xbf16>
    %167 = arith.negf %166 : vector<8x128xbf16>
    %168 = math.exp %167 : vector<8x128xbf16>
    %cst_41 = arith.constant 1.000000e+00 : bf16
    %169 = vector.broadcast %cst_41 : bf16 to vector<8x128xbf16>
    %170 = arith.addf %169, %168 : vector<8x128xbf16>
    %171 = arith.divf %169, %170 : vector<8x128xbf16>
    %172 = arith.mulf %166, %171 : vector<8x128xbf16>
    %173 = arith.extf %172 : vector<8x128xbf16> to vector<8x128xf32>
    %c0_42 = arith.constant 0 : index
    %c0_43 = arith.constant 0 : index
    %174 = vector.load %arg12[%c0_42, %c0_43] : memref<1x128xf32, #tpu.memory_space<vmem>>, vector<1x128xf32>
    %175 = vector.broadcast %174 : vector<1x128xf32> to vector<8x128xf32>
    %176 = arith.mulf %173, %175 : vector<8x128xf32>
    %cst_44 = arith.constant dense<0.000000e+00> : vector<8xf32>
    %177 = vector.multi_reduction <add>, %176, %cst_44 [1] : vector<8x128xf32> to vector<8xf32>
    %178 = vector.shape_cast %177 : vector<8xf32> to vector<8x1xf32>
    %c0_45 = arith.constant 0 : index
    %c0_46 = arith.constant 0 : index
    %179 = vector.load %arg13[%c0_45, %c0_46] : memref<1x1xf32, #tpu.memory_space<vmem>>, vector<1x1xf32>
    %180 = vector.broadcast %179 : vector<1x1xf32> to vector<8x1xf32>
    %181 = arith.addf %178, %180 : vector<8x1xf32>
    %c0_47 = arith.constant 0 : index
    %c0_48 = arith.constant 0 : index
    %182 = vector.load %arg14[%c0_47, %c0_48] : memref<8x1xf32, #tpu.memory_space<vmem>>, vector<8x1xf32>
    tpu.vector_store %arg14[%c0_47, %c0_48], %181 {strides = array<i32>} : memref<8x1xf32, #tpu.memory_space<vmem>>, vector<8x1xf32>,
    return
  }
  func.func @transform_0(%arg0: i32) -> (i32, i32) {
    %c0_i32 = arith.constant 0 : i32
    %c0_i32_0 = arith.constant 0 : i32
    return %arg0, %c0_i32 : i32, i32
  }
  func.func @transform_1(%arg0: i32) -> (i32, i32) {
    %c0_i32 = arith.constant 0 : i32
    %c0_i32_0 = arith.constant 0 : i32
    return %arg0, %c0_i32 : i32, i32
  }
  func.func @transform_2(%arg0: i32) -> (i32, i32) {
    %c0_i32 = arith.constant 0 : i32
    %c0_i32_0 = arith.constant 0 : i32
    return %arg0, %c0_i32 : i32, i32
  }
  func.func @transform_3(%arg0: i32) -> (i32, i32) {
    %c0_i32 = arith.constant 0 : i32
    %c0_i32_0 = arith.constant 0 : i32
    %c0_i32_1 = arith.constant 0 : i32
    return %c0_i32, %c0_i32_0 : i32, i32
  }
  func.func @transform_4(%arg0: i32) -> (i32, i32) {
    %c0_i32 = arith.constant 0 : i32
    %c0_i32_0 = arith.constant 0 : i32
    %c0_i32_1 = arith.constant 0 : i32
    return %c0_i32, %c0_i32_0 : i32, i32
  }
  func.func @transform_5(%arg0: i32) -> (i32, i32) {
    %c0_i32 = arith.constant 0 : i32
    %c0_i32_0 = arith.constant 0 : i32
    %c0_i32_1 = arith.constant 0 : i32
    return %c0_i32, %c0_i32_0 : i32, i32
  }
  func.func @transform_6(%arg0: i32) -> (i32, i32) {
    %c0_i32 = arith.constant 0 : i32
    %c0_i32_0 = arith.constant 0 : i32
    %c0_i32_1 = arith.constant 0 : i32
    return %c0_i32, %c0_i32_0 : i32, i32
  }
  func.func @transform_7(%arg0: i32) -> (i32, i32) {
    %c0_i32 = arith.constant 0 : i32
    %c0_i32_0 = arith.constant 0 : i32
    %c0_i32_1 = arith.constant 0 : i32
    return %c0_i32, %c0_i32_0 : i32, i32
  }
  func.func @transform_8(%arg0: i32) -> (i32, i32) {
    %c0_i32 = arith.constant 0 : i32
    %c0_i32_0 = arith.constant 0 : i32
    %c0_i32_1 = arith.constant 0 : i32
    return %c0_i32, %c0_i32_0 : i32, i32
  }
  func.func @transform_9(%arg0: i32) -> (i32, i32) {
    %c0_i32 = arith.constant 0 : i32
    %c0_i32_0 = arith.constant 0 : i32
    %c0_i32_1 = arith.constant 0 : i32
    return %c0_i32, %c0_i32_0 : i32, i32
  }
  func.func @transform_10(%arg0: i32) -> (i32, i32) {
    %c0_i32 = arith.constant 0 : i32
    %c0_i32_0 = arith.constant 0 : i32
    %c0_i32_1 = arith.constant 0 : i32
    return %c0_i32, %c0_i32_0 : i32, i32
  }
  func.func @transform_11(%arg0: i32) -> (i32, i32) {
    %c0_i32 = arith.constant 0 : i32
    %c0_i32_0 = arith.constant 0 : i32
    %c0_i32_1 = arith.constant 0 : i32
    return %c0_i32, %c0_i32_0 : i32, i32
  }
  func.func @transform_12(%arg0: i32) -> (i32, i32) {
    %c0_i32 = arith.constant 0 : i32
    %c0_i32_0 = arith.constant 0 : i32
    %c0_i32_1 = arith.constant 0 : i32
    return %c0_i32, %c0_i32_0 : i32, i32
  }
  func.func @transform_13(%arg0: i32) -> (i32, i32) {
    %c0_i32 = arith.constant 0 : i32
    %c0_i32_0 = arith.constant 0 : i32
    return %arg0, %c0_i32 : i32, i32
  }
}

</mosaic_0001>

<bundles_post_ra>
// kernel: _forward_impl.1
= control target key start
LH: loop header
LB: loop body
LE: loop exit
PB: predicated region body
PF: predicated region fallthrough
CT: control target
= control target key end

     0   :  { %s2627_s0 = inlined_call_operand.hbm [shape: s32[8,5], index: 0, kind: input, shape index: {}]   ;;  %s2628_s1 = inlined_call_operand.hbm [shape: f32[8,5], index: 1, kind: input, shape index: {}]   ;;  %s2629_s2 = inlined_call_operand.vmem [shape: f32[8,8], index: 2, kind: input, shape index: {}]   ;;  %s2630_s3 = inlined_call_operand.hbm [shape: bf16[128,384], index: 3, kind: input, shape index: {}]   ;;  %s2631_s4 = inlined_call_operand.vmem [shape: f32[1,384], index: 4, kind: input, shape index: {}]   ;;  %s2632_s5 = inlined_call_operand.hbm [shape: bf16[384,256], index: 5, kind: input, shape index: {}]   ;;  %s2633_s6 = inlined_call_operand.vmem [shape: f32[1,256], index: 6, kind: input, shape index: {}]   ;;  %s2634_s7 = inlined_call_operand.hbm [shape: bf16[256,384], index: 7, kind: input, shape index: {}]   ;;  %s2635_s8 = inlined_call_operand.vmem [shape: f32[1,384], index: 8, kind: input, shape index: {}]   ;;  %s2636_s9 = inlined_call_operand.hbm [shape: bf16[384,128], index: 9, kind: input, shape index: {}]   ;;  %s2637_s10 = inlined_call_operand.vmem [shape: f32[1,128], index: 10, kind: input, shape index: {}]   ;;  %s2638_s11 = inlined_call_operand.vmem [shape: f32[1,128], index: 11, kind: input, shape index: {}]   ;;  %s2639_s12 = inlined_call_operand.<no memory space> [shape: f32[1,1], index: 12, kind: input, shape index: {}]   ;;  %s2640_s13 = inlined_call_operand.vmem [shape: f32[8,1], index: 13, kind: output, shape index: {}]  }
   0x1   :  { %v18_v0 = vstv %s2639_s12 }
   0x2   :  { %19 = vst [vmem:[#allocation2] sm:$0x1] %v18_v0 }
   0x3   :  { %20 = vsyncpa [#allocation4], 0 }
   0x4   :  { %21 = vsyncpa [#allocation6], 0 }
   0x5   :  { %22 = vsyncpa [#allocation9], 0 }
   0x6   :  { %23 = vsyncpa [#allocation12], 0  ;;  %s2362_s27 = smov [#allocation5]   ;;  %s2363_s29 = smov [#allocation8]  }
   0x7   :  { %s40_s28 = sshll.u32 %s2362_s27, 4  ;;  %s65_s30 = sshll.u32 %s2363_s29, 4  ;;  %s41_s28 = int_to_ptr.vmem [resolvable:$true] %s40_s28  ;;  %s2457_s30 = int_to_ptr.vmem [resolvable:$true] %s65_s30 }
   0x8   :  { %s2222_s16 = scalar_lea.hbm %s2628_s1, 128 }
   0x9   :  { %p2223_p0 = scmp.ne.s32.totalorder %s2628_s1, %s2222_s16  ;;  %p2226_p1 = scmp.lt.u32.totalorder %s2222_s16, %s2628_s1 }
   0xb   :  { %p2228_p2 = pnand %p2226_p1, %p2223_p0 }
   0xd   :  { %2231 = shalt.err (!%p2228_p2)
}
   0xe   :  { %s2232_s20 = scalar_lea.vmem %s41_s28, 128  ;;  %p2237_p4 = scmp.lt.s32.totalorder %s41_s28, %s41_s28 }
   0xf   :  { %p2233_p3 = scmp.ne.s32.totalorder %s41_s28, %s2232_s20  ;;  %p2238_p5 = scmp.lt.s32.totalorder %s2232_s20, %s2232_s20 }
  0x11   :  { %p2239_p6 = por %p2238_p5, %p2237_p4 }
  0x13   :  { %p2240_p7 = pnand %p2239_p6, %p2233_p3 }
  0x15   :  { %2243 = shalt.err (!%p2240_p7)
}
  0x16   :  { %43 = dma.hbm_to_vmem [thread:$0]  %s2628_s1, 128, %s41_s28, [#allocation6]  }
  0x17   :  { %s2244_s25 = scalar_lea.hbm %s2632_s5, 6144 }
  0x18   :  { %p2245_p8 = scmp.ne.s32.totalorder %s2632_s5, %s2244_s25  ;;  %p2248_p9 = scmp.lt.u32.totalorder %s2244_s25, %s2632_s5 }
  0x1a   :  { %p2250_p10 = pnand %p2248_p9, %p2245_p8 }
  0x1c   :  { %2253 = shalt.err (!%p2250_p10)
}
  0x1d   :  { %s2254_s15 = scalar_lea.vmem %s2457_s30, 6144  ;;  %p2259_p12 = scmp.lt.s32.totalorder %s2457_s30, %s2457_s30 }
  0x1e   :  { %p2255_p11 = scmp.ne.s32.totalorder %s2457_s30, %s2254_s15  ;;  %p2260_p13 = scmp.lt.s32.totalorder %s2254_s15, %s2254_s15 }
  0x20   :  { %p2261_p0 = por %p2260_p13, %p2259_p12 }
  0x22   :  { %p2262_p1 = pnand %p2261_p0, %p2255_p11 }
  0x24   :  { %2265 = shalt.err (!%p2262_p1)
}
  0x25   :  { %s2364_s1 = smov 128   ;;  %s2365_s28 = smov 8  }
  0x26   :  { %71 = dma.hbm_to_vmem [thread:$0]  %s2632_s5, 6144, %s2457_s30, [#allocation9], %s2364_s1, %s2364_s1, %s2365_s28  }
  0x27   :  { %s2366_s18 = smov [#allocation3]   ;;  %s2367_s19 = smov [#allocation7]  }
  0x28   :  { %s30_s12 = sshll.u32 %s2366_s18, 4  ;;  %s51_s20 = sshll.u32 %s2367_s19, 4  ;;  %s31_s12 = int_to_ptr.vmem [resolvable:$true] %s30_s12  ;;  %s2488_s20 = int_to_ptr.vmem [resolvable:$true] %s51_s20 }
  0x29   :  { %s2266_s23 = scalar_lea.hbm %s2627_s0, 128 }
  0x2a   :  { %p2267_p2 = scmp.ne.s32.totalorder %s2627_s0, %s2266_s23  ;;  %p2270_p3 = scmp.lt.u32.totalorder %s2266_s23, %s2627_s0 }
  0x2c   :  { %p2272_p4 = pnand %p2270_p3, %p2267_p2 }
  0x2e   :  { %2275 = shalt.err (!%p2272_p4)
}
  0x2f   :  { %s2276_s5 = scalar_lea.vmem %s31_s12, 128  ;;  %p2281_p6 = scmp.lt.s32.totalorder %s31_s12, %s31_s12 }
  0x30   :  { %p2277_p5 = scmp.ne.s32.totalorder %s31_s12, %s2276_s5  ;;  %p2282_p7 = scmp.lt.s32.totalorder %s2276_s5, %s2276_s5 }
  0x32   :  { %p2283_p8 = por %p2282_p7, %p2281_p6 }
  0x34   :  { %p2284_p9 = pnand %p2283_p8, %p2277_p5 }
  0x36   :  { %2287 = shalt.err (!%p2284_p9)
}
  0x37   :  { %33 = dma.hbm_to_vmem [thread:$0]  %s2627_s0, 128, %s31_s12, [#allocation4]  }
  0x38   :  { %s2288_s1 = scalar_lea.hbm %s2630_s3, 3072 }
  0x39   :  { %p2289_p10 = scmp.ne.s32.totalorder %s2630_s3, %s2288_s1  ;;  %p2292_p11 = scmp.lt.u32.totalorder %s2288_s1, %s2630_s3 }
  0x3b   :  { %p2294_p12 = pnand %p2292_p11, %p2289_p10 }
  0x3d   :  { %2297 = shalt.err (!%p2294_p12)
}
  0x3e   :  { %s2298_s19 = scalar_lea.vmem %s2488_s20, 3072  ;;  %p2303_p0 = scmp.lt.s32.totalorder %s2488_s20, %s2488_s20 }
  0x3f   :  { %p2299_p13 = scmp.ne.s32.totalorder %s2488_s20, %s2298_s19  ;;  %p2304_p1 = scmp.lt.s32.totalorder %s2298_s19, %s2298_s19 }
  0x41   :  { %p2305_p2 = por %p2304_p1, %p2303_p0 }
  0x43   :  { %p2306_p3 = pnand %p2305_p2, %p2299_p13 }
  0x45   :  { %2309 = shalt.err (!%p2306_p3)
}
  0x46   :  { %s2368_s0 = smov 192   ;;  %s2369_s12 = smov 12  }
  0x47   :  { %57 = dma.hbm_to_vmem [thread:$0]  %s2630_s3, 3072, %s2488_s20, [#allocation6], %s2368_s0, %s2368_s0, %s2369_s12  }
  0x48   :  { %s2370_s23 = smov [#allocation10]   ;;  %s2371_s25 = smov [#allocation11]  }
  0x49   :  { %s79_s24 = sshll.u32 %s2370_s23, 4  ;;  %s93_s26 = sshll.u32 %s2371_s25, 4  ;;  %s80_s24 = int_to_ptr.vmem [resolvable:$true] %s79_s24  ;;  %s2519_s26 = int_to_ptr.vmem [resolvable:$true] %s93_s26 }
  0x4a   :  { %s2310_s30 = scalar_lea.hbm %s2634_s7, 6144 }
  0x4b   :  { %p2311_p4 = scmp.ne.s32.totalorder %s2634_s7, %s2310_s30  ;;  %p2314_p5 = scmp.lt.u32.totalorder %s2310_s30, %s2634_s7 }
  0x4d   :  { %p2316_p6 = pnand %p2314_p5, %p2311_p4 }
  0x4f   :  { %2319 = shalt.err (!%p2316_p6)
}
  0x50   :  { %s2320_s3 = scalar_lea.vmem %s80_s24, 6144  ;;  %p2325_p8 = scmp.lt.s32.totalorder %s80_s24, %s80_s24 }
  0x51   :  { %p2321_p7 = scmp.ne.s32.totalorder %s80_s24, %s2320_s3  ;;  %p2326_p9 = scmp.lt.s32.totalorder %s2320_s3, %s2320_s3 }
  0x53   :  { %p2327_p10 = por %p2326_p9, %p2325_p8 }
  0x55   :  { %p2328_p11 = pnand %p2327_p10, %p2321_p7 }
  0x57   :  { %2331 = shalt.err (!%p2328_p11)
}
  0x58   :  { %85 = dma.hbm_to_vmem [thread:$0]  %s2634_s7, 6144, %s80_s24, [#allocation9], %s2368_s0, %s2368_s0, %s2369_s12  }
  0x59   :  { %s2332_s18 = scalar_lea.hbm %s2636_s9, 3072 }
  0x5a   :  { %p2333_p12 = scmp.ne.s32.totalorder %s2636_s9, %s2332_s18  ;;  %p2336_p13 = scmp.lt.u32.totalorder %s2332_s18, %s2636_s9 }
  0x5c   :  { %p2338_p0 = pnand %p2336_p13, %p2333_p12 }
  0x5e   :  { %2341 = shalt.err (!%p2338_p0)
}
  0x5f   :  { %s2342_s25 = scalar_lea.vmem %s2519_s26, 3072  ;;  %p2347_p2 = scmp.lt.s32.totalorder %s2519_s26, %s2519_s26 }
  0x60   :  { %p2343_p1 = scmp.ne.s32.totalorder %s2519_s26, %s2342_s25  ;;  %p2348_p3 = scmp.lt.s32.totalorder %s2342_s25, %s2342_s25 }
  0x62   :  { %p2349_p4 = por %p2348_p3, %p2347_p2 }
  0x64   :  { %p2350_p5 = pnand %p2349_p4, %p2343_p1 }
  0x66   :  { %2353 = shalt.err (!%p2350_p5)
}
  0x67   :  { %s2372_s7 = smov 64   ;;  %s2373_s0 = smov 4  }
  0x68   :  { %99 = dma.hbm_to_vmem [thread:$0]  %s2636_s9, 3072, %s2519_s26, [#allocation12], %s2372_s7, %s2372_s7, %s2373_s0  }
  0x69   :  { %2354 = dma.done.wait [#allocation4], 128  }
  0x6a   :  { %2355 = vsyncadd [#allocation4], 4294967168 }
  0x6b   :  { %2356 = dma.done.wait [#allocation6], 3200  }
  0x6c   :  { %2357 = vsyncadd [#allocation6], 4294964096 }
  0x6d   :  { %2358 = dma.done.wait [#allocation9], 12288  }
  0x6e   :  { %2359 = vsyncadd [#allocation9], 4294955008 }
  0x6f   :  { %2360 = dma.done.wait [#allocation12], 3072  }
  0x70   :  { %2361 = vsyncadd [#allocation12], 4294964224  ;;  %v2374_v1 = vmov 0   ;;  %v127_v2 = vld [vmem:[#allocation5] sm:$0xff]  ;;  %v126_v3 = vld [vmem:[#allocation3] sm:$0xff]  ;;  %v2375_v5 = vmov 1   ;;  %v129_v46 = vlaneseq }
  0x71   :  { %1978 = vset.pattern.permute.xlu1 %v2374_v1  ;;  %1977 = vset.pattern.permute.xlu0 %v2374_v1  ;;  %v142_v4 = vadd.s32 20, %v126_v3  ;;  %v153_v6 = vadd.s32 40, %v126_v3  ;;  %v2376_v7 = vmov 2   ;;  %v164_v8 = vadd.s32 60, %v126_v3  ;;  %v2556_v12 = vld [vmem:[%s2629_s2] sm:$0xff] }
  0x72   :  { %453 = vmatprep.mubr.bf16.mxu0 %v2374_v1  ;;  %137 = vperm.xlu1 %1978, %v127_v2   ;;  %v175_v9 = vadd.s32 80, %v126_v3  ;;  %v2377_v10 = vmov 3   ;;  %v2378_v11 = vmov 4   ;;  %v1994_v13 = vld [vmem:[#allocation7 + $0x4] ss:$12 sps:$4 sm:$0xff]   ;;  %v2379_v17 = vmov 0.0  }
  0x73   :  { %132 = vperm.xlu0 %1977, %v126_v3   ;;  %v1996_v14 = vld [vmem:[#allocation7] ss:$12 sps:$4 sm:$0xff]   ;;  %v1997_v15 = vld [vmem:[#allocation7 + $0x8] ss:$12 sps:$4 sm:$0xff]   ;;  %421 = vmatprep.subr.bf16.mxu0 %v1994_v13  ;;  %v2000_v18 = vld [vmem:[#allocation7 + $0x18] ss:$12 sps:$4 sm:$0xff]  }
  0x74   :  { %v1998_v16 = vld [vmem:[#allocation7 + $0x1c] ss:$12 sps:$4 sm:$0xff]   ;;  %1909 = vmatprep.subr.bf16.mxu1 %v2379_v17  ;;  %422 = vmatpush1.bf16.msra.mxu0 %v1996_v14  ;;  %v2001_v19 = vld [vmem:[#allocation7 + $0x20] ss:$12 sps:$4 sm:$0xff]   ;;  %v2380_v20 = vmov 7   ;;  %v2381_v31 = vmov 5  }
  0x75   :  { %1910 = vmatpush3.bf16.msra.mxu1 %v1997_v15  ;;  %423 = vmatprep.subr.bf16.mxu0 %v1998_v16  ;;  %v2002_v21 = vld [vmem:[#allocation7 + $0x34] ss:$12 sps:$4 sm:$0xff]   ;;  %v2004_v22 = vld [vmem:[#allocation7 + $0x30] ss:$12 sps:$4 sm:$0xff]   ;;  %v2005_v23 = vld [vmem:[#allocation7 + $0x38] ss:$12 sps:$4 sm:$0xff]  }
  0x76   :  { %1979 = vset.pattern.permute.xlu1 %v2375_v5  ;;  %1911 = vmatprep.subr.bf16.mxu1 %v2379_v17  ;;  %v2006_v24 = vld [vmem:[#allocation7 + $0x4c] ss:$12 sps:$4 sm:$0xff]   ;;  %v2008_v25 = vld [vmem:[#allocation7 + $0x48] ss:$12 sps:$4 sm:$0xff]   ;;  %v2009_v26 = vld [vmem:[#allocation7 + $0x50] ss:$12 sps:$4 sm:$0xff]  }
  0x77   :  { %1980 = vset.pattern.permute.xlu0 %v2375_v5  ;;  %148 = vperm.xlu1 %1979, %v127_v2   ;;  %v2010_v27 = vld [vmem:[#allocation7 + $0x64] ss:$12 sps:$4 sm:$0xff]   ;;  %v2012_v28 = vld [vmem:[#allocation7 + $0x60] ss:$12 sps:$4 sm:$0xff]   ;;  %v2013_v29 = vld [vmem:[#allocation7 + $0x68] ss:$12 sps:$4 sm:$0xff]  }
  0x78   :  { %144 = vperm.xlu0 %1980, %v142_v4   ;;  %424 = vmatpush1.bf16.msra.mxu0 %v2000_v18  ;;  %v2014_v30 = vld [vmem:[#allocation7 + $0x7c] ss:$12 sps:$4 sm:$0xff]   ;;  %v2016_v32 = vld [vmem:[#allocation7 + $0x78] ss:$12 sps:$4 sm:$0xff]   ;;  %v2017_v33 = vld [vmem:[#allocation7 + $0x80] ss:$12 sps:$4 sm:$0xff]  }
  0x79   :  { %1912 = vmatpush3.bf16.msra.mxu1 %v2001_v19  ;;  %425 = vmatprep.subr.bf16.mxu0 %v2002_v21  ;;  %v2018_v34 = vld [vmem:[#allocation7 + $0x94] ss:$12 sps:$4 sm:$0xff]   ;;  %v2020_v35 = vld [vmem:[#allocation7 + $0x90] ss:$12 sps:$4 sm:$0xff]   ;;  %v2021_v36 = vld [vmem:[#allocation7 + $0x98] ss:$12 sps:$4 sm:$0xff]  }
  0x7a   :  { %1913 = vmatprep.subr.bf16.mxu1 %v2379_v17  ;;  %v2382_v37 = vmov 6   ;;  %v2022_v38 = vld [vmem:[#allocation7 + $0xac] ss:$12 sps:$4 sm:$0xff]   ;;  %v2024_v39 = vld [vmem:[#allocation7 + $0xa8] ss:$12 sps:$4 sm:$0xff]   ;;  %vm2383_vm0 = vmmov 0  }
  0x7b   :  { %1982 = vset.pattern.permute.xlu1 %v2376_v7  ;;  %v2025_v40 = vld [vmem:[#allocation7 + $0xb0] ss:$12 sps:$4 sm:$0xff]   ;;  %1925 = vmatprep.mubr.msk.bf16.mxu1 %vm2383_vm0, %v2379_v17  ;;  %v2028_v41 = vld [vmem:[#allocation8 + $0x4] ss:$8 sps:$4 sm:$0xff]   ;;  %v130_v48 = vand.u32 127, %v129_v46  ;;  %vm1681_vm14 = vcmask 7168  }
  0x7c   :  { %1981 = vset.pattern.permute.xlu0 %v2376_v7  ;;  %155 = vperm.xlu1 %1982, %v153_v6  }
  0x7d   :  { %159 = vperm.xlu0 %1981, %v127_v2   ;;  %426 = vmatpush1.bf16.msra.mxu0 %v2004_v22  ;;  %vm186_vm6 = vcmp.eq.s32.totalorder %v130_v48, 100  ;;  %vm194_vm7 = vcmp.eq.s32.totalorder %v130_v48, 101  ;;  %vm201_vm8 = vcmp.eq.s32.totalorder %v130_v48, 102  ;;  %vm208_vm9 = vcmp.eq.s32.totalorder %v130_v48, 103 }
  0x7e   :  { %1914 = vmatpush3.bf16.msra.mxu1 %v2005_v23  ;;  %427 = vmatprep.subr.bf16.mxu0 %v2006_v24  ;;  %vm215_vm10 = vcmp.eq.s32.totalorder %v130_v48, 104  ;;  %vm222_vm11 = vcmp.eq.s32.totalorder %v130_v48, 105  ;;  %vm229_vm12 = vcmp.eq.s32.totalorder %v130_v48, 106  ;;  %vm236_vm13 = vcmp.eq.s32.totalorder %v130_v48, 107 }
  0x7f   :  { %1915 = vmatprep.subr.bf16.mxu1 %v2379_v17 }
  0x80   :  { %1983 = vset.pattern.permute.xlu1 %v2377_v10 }
  0x81   :  { %1984 = vset.pattern.permute.xlu0 %v2378_v11  ;;  %166 = vperm.xlu1 %1983, %v164_v8  }
  0x82   :  { %177 = vperm.xlu0 %1984, %v175_v9   ;;  %428 = vmatpush1.bf16.msra.mxu0 %v2008_v25  ;;  %v2026_v25 = vld [vmem:[#allocation8] ss:$8 sps:$4 sm:$0xff]  }
  0x83   :  { %1916 = vmatpush3.bf16.msra.mxu1 %v2009_v26  ;;  %429 = vmatprep.subr.bf16.mxu0 %v2010_v27  ;;  %v2031_v27 = vld [vmem:[#allocation8 + $0x14] ss:$8 sps:$4 sm:$0xff]  }
  0x84   :  { %1917 = vmatprep.subr.bf16.mxu1 %v2379_v17 }
  0x85   :  { %170 = vperm.xlu1 %1983, %v127_v2  }
  0x86   :  { %1987 = vset.pattern.permute.xlu0 %v2375_v5  ;;  %430 = vmatpush1.bf16.msra.mxu0 %v2012_v28  ;;  %v2029_v28 = vld [vmem:[#allocation8 + $0x10] ss:$8 sps:$4 sm:$0xff]  }
  0x87   :  { %196 = vperm.xlu0 %1987, %v2556_v12   ;;  %1918 = vmatpush3.bf16.msra.mxu1 %v2013_v29  ;;  %v2034_v29 = vld [vmem:[#allocation8 + $0x24] ss:$8 sps:$4 sm:$0xff]  }
  0x88   :  { %431 = vmatprep.subr.bf16.mxu0 %v2014_v30  ;;  %1919 = vmatprep.subr.bf16.mxu1 %v2379_v17  ;;  %v2032_v30 = vld [vmem:[#allocation8 + $0x20] ss:$8 sps:$4 sm:$0xff]  }
  0x89   :  { %1985 = vset.pattern.permute.xlu1 %v2378_v11 }
  0x8a   :  { %181 = vperm.xlu1 %1985, %v127_v2   ;;  %432 = vmatpush1.bf16.msra.mxu0 %v2016_v32  ;;  %v2035_v32 = vld [vmem:[#allocation8 + $0x30] ss:$8 sps:$4 sm:$0xff]  }
  0x8b   :  { %1990 = vset.pattern.permute.xlu0 %v2378_v11  ;;  %1920 = vmatpush3.bf16.msra.mxu1 %v2017_v33  ;;  %v2040_v33 = vld [vmem:[#allocation8 + $0x44] ss:$8 sps:$4 sm:$0xff]  }
  0x8c   :  { %217 = vperm.xlu0 %1990, %v2556_v12   ;;  %433 = vmatprep.subr.bf16.mxu0 %v2018_v34  ;;  %v2038_v34 = vld [vmem:[#allocation8 + $0x40] ss:$8 sps:$4 sm:$0xff]  }
  0x8d   :  { %1921 = vmatprep.subr.bf16.mxu1 %v2379_v17 }
  0x8e   :  { %1986 = vset.pattern.permute.xlu1 %v2374_v1  ;;  %434 = vmatpush1.bf16.msra.mxu0 %v2020_v35  ;;  %v2043_v35 = vld [vmem:[#allocation8 + $0x54] ss:$8 sps:$4 sm:$0xff]  }
  0x8f   :  { %189 = vperm.xlu1 %1986, %v2556_v12   ;;  %1922 = vmatpush3.bf16.msra.mxu1 %v2021_v36  ;;  %v2041_v36 = vld [vmem:[#allocation8 + $0x50] ss:$8 sps:$4 sm:$0xff]  }
  0x90   :  { %1993 = vset.pattern.permute.xlu0 %v2380_v20  ;;  %435 = vmatprep.subr.bf16.mxu0 %v2022_v38  ;;  %v2044_v38 = vld [vmem:[#allocation8 + $0x60] ss:$8 sps:$4 sm:$0xff]  }
  0x91   :  { %238 = vperm.xlu0 %1993, %v2556_v12   ;;  %1923 = vmatprep.subr.bf16.mxu1 %v2379_v17 }
  0x92   :  { %436 = vmatpush1.bf16.msra.mxu0 %v2024_v39  ;;  %v2049_v39 = vld [vmem:[#allocation8 + $0x74] ss:$8 sps:$4 sm:$0xff]  }
  0x93   :  { %1988 = vset.pattern.permute.xlu1 %v2376_v7  ;;  %1924 = vmatpush3.bf16.msra.mxu1 %v2025_v40  ;;  %v2047_v40 = vld [vmem:[#allocation8 + $0x70] ss:$8 sps:$4 sm:$0xff]  }
  0x94   :  { %203 = vperm.xlu1 %1988, %v2556_v12   ;;  %829 = vmatprep.subr.bf16.mxu0 %v2028_v41  ;;  %v2052_v41 = vld [vmem:[#allocation8 + $0x84] ss:$8 sps:$4 sm:$0xff]  }
  0x98   :  { %1989 = vset.pattern.permute.xlu1 %v2377_v10 }
  0x99   :  { %210 = vperm.xlu1 %1989, %v2556_v12  }
  0x9d   :  { %1991 = vset.pattern.permute.xlu1 %v2381_v31  ;;  %v2037_v31 = vld [vmem:[#allocation8 + $0x34] ss:$8 sps:$4 sm:$0xff]  }
  0x9e   :  { %224 = vperm.xlu1 %1991, %v2556_v12  }
  0xa2   :  { %1992 = vset.pattern.permute.xlu1 %v2382_v37  ;;  %v2046_v37 = vld [vmem:[#allocation8 + $0x64] ss:$8 sps:$4 sm:$0xff]  }
  0xa3   :  { %231 = vperm.xlu1 %1992, %v2556_v12  }
  0xf1   :  { %v138_v42 = vpop.permute.xlu1 %137 }
  0xf2   :  { %v133_v44 = vpop.permute.xlu0 %132 }
  0xf3   :  { %vm134_vm2 = vcmp.eq.s32.totalorder %v130_v48, %v133_v44  ;;  %v2053_v44 = vld [vmem:[#allocation8 + $0x90] ss:$8 sps:$4 sm:$0xff]  }
  0xf4   :  { %v140_v54 = vsel %vm134_vm2, %v138_v42, 0.0  ;;  %v2050_v42 = vld [vmem:[#allocation8 + $0x80] ss:$8 sps:$4 sm:$0xff]  }
  0xf6   :  { %v149_v43 = vpop.permute.xlu1 %148 }
  0xf7   :  { %v145_v47 = vpop.permute.xlu0 %144 }
  0xf8   :  { %vm146_vm1 = vcmp.eq.s32.totalorder %v130_v48, %v145_v47  ;;  %v2056_v47 = vld [vmem:[#allocation8 + $0xa0] ss:$8 sps:$4 sm:$0xff]  }
  0xf9   :  { %v151_v52 = vsel %vm146_vm1, %v149_v43, 0.0  ;;  %v2055_v43 = vld [vmem:[#allocation8 + $0x94] ss:$8 sps:$4 sm:$0xff]  }
  0xfa   :  { %v152_v56 = vadd.f32 %v151_v52, %v140_v54  ;;  %v2067_v52 = vld [vmem:[#allocation8 + $0xd4] ss:$8 sps:$4 sm:$0xff]   ;;  %v2070_v54 = vld [vmem:[#allocation8 + $0xe4] ss:$8 sps:$4 sm:$0xff]  }
  0xfb   :  { %v156_v45 = vpop.permute.xlu1 %155 }
  0xfc   :  { %v160_v50 = vpop.permute.xlu0 %159  ;;  %vm157_vm3 = vcmp.eq.s32.totalorder %v130_v48, %v156_v45  ;;  %v2058_v45 = vld [vmem:[#allocation8 + $0xa4] ss:$8 sps:$4 sm:$0xff]  }
  0xfd   :  { %v162_v55 = vsel %vm157_vm3, %v160_v50, 0.0  ;;  %v2064_v50 = vld [vmem:[#allocation8 + $0xc4] ss:$8 sps:$4 sm:$0xff]  }
  0xfe   :  { %v163_v59 = vadd.f32 %v162_v55, %v152_v56  ;;  %v2068_v55 = vld [vmem:[#allocation8 + $0xe0] ss:$8 sps:$4 sm:$0xff]   ;;  %v2073_v56 = vld [vmem:[#allocation8 + $0xf4] ss:$8 sps:$4 sm:$0xff]  }
 0x100   :  { %v167_v49 = vpop.permute.xlu1 %166 }
 0x101   :  { %v178_v53 = vpop.permute.xlu0 %177  ;;  %vm168_vm4 = vcmp.eq.s32.totalorder %v130_v48, %v167_v49  ;;  %v2059_v49 = vld [vmem:[#allocation8 + $0xb0] ss:$8 sps:$4 sm:$0xff]  }
 0x102   :  { %vm179_vm5 = vcmp.eq.s32.totalorder %v130_v48, %v178_v53  ;;  %v2061_v48 = vld [vmem:[#allocation8 + $0xb4] ss:$8 sps:$4 sm:$0xff]   ;;  %v2065_v53 = vld [vmem:[#allocation8 + $0xd0] ss:$8 sps:$4 sm:$0xff]  }
 0x104   :  { %v171_v51 = vpop.permute.xlu1 %170 }
 0x105   :  { %v173_v57 = vsel %vm168_vm4, %v171_v51, 0.0  ;;  %v2062_v51 = vld [vmem:[#allocation8 + $0xc0] ss:$8 sps:$4 sm:$0xff]  }
 0x106   :  { %v174_v61 = vadd.f32 %v173_v57, %v163_v59  ;;  %v197_v0 = vpop.permute.xlu0 %196  ;;  %v2071_v57 = vld [vmem:[#allocation8 + $0xf0] ss:$8 sps:$4 sm:$0xff]   ;;  %v2098_v59 = vld [vmem:[#allocation10] ss:$12 sps:$4 sm:$0xff]  }
 0x107   :  { %v199_v4 = vsel %vm194_vm7, %v197_v0, 0.0  ;;  %v2104_v0 = vld [vmem:[#allocation10 + $0x30] ss:$12 sps:$4 sm:$0xff]  }
 0x109   :  { %v182_v58 = vpop.permute.xlu1 %181 }
 0x10a   :  { %v184_v60 = vsel %vm179_vm5, %v182_v58, 0.0  ;;  %v2076_v58 = vld [vmem:[#allocation8 + $0x104] ss:$8 sps:$4 sm:$0xff]  }
 0x10b   :  { %v185_v62 = vadd.f32 %v184_v60, %v174_v61  ;;  %v218_v10 = vpop.permute.xlu0 %217  ;;  %v2100_v60 = vld [vmem:[#allocation10 + $0x4] ss:$12 sps:$4 sm:$0xff]   ;;  %v2103_v61 = vld [vmem:[#allocation10 + $0x1c] ss:$12 sps:$4 sm:$0xff]  }
 0x10c   :  { %v220_v13 = vsel %vm215_vm10, %v218_v10, 0.0  ;;  %1266 = vmatprep.subr.bf16.mxu1 %v2100_v60  ;;  %v2579_v10 = vshrl.u32 %v129_v46, 7  ;;  %v2097_v60 = vld [vmem:[#allocation8 + $0x174] ss:$8 sps:$4 sm:$0xff]  }
 0x10e   :  { %v190_v63 = vpop.permute.xlu1 %189 }
 0x10f   :  { %v192_v2 = vsel %vm186_vm6, %v190_v63, 0.0  ;;  %v2106_v63 = vld [vmem:[#allocation10 + $0x34] ss:$12 sps:$4 sm:$0xff]  }
 0x110   :  { %v193_v3 = vadd.f32 %v192_v2, %v185_v62  ;;  %v239_v18 = vpop.permute.xlu0 %238  ;;  %v2101_v62 = vld [vmem:[#allocation10 + $0x18] ss:$12 sps:$4 sm:$0xff]  }
 0x111   :  { %v241_v22 = vsel %vm236_vm13, %v239_v18, 0.0  ;;  %v2109_v2 = vld [vmem:[#allocation10 + $0x4c] ss:$12 sps:$4 sm:$0xff]  }
 0x112   :  { %v200_v6 = vadd.f32 %v199_v4, %v193_v3  ;;  %v2107_v3 = vld [vmem:[#allocation10 + $0x48] ss:$12 sps:$4 sm:$0xff]   ;;  %v2112_v4 = vld [vmem:[#allocation10 + $0x64] ss:$12 sps:$4 sm:$0xff]  }
 0x113   :  { %v204_v5 = vpop.permute.xlu1 %203 }
 0x114   :  { %v206_v7 = vsel %vm201_vm8, %v204_v5, 0.0  ;;  %v2110_v5 = vld [vmem:[#allocation10 + $0x60] ss:$12 sps:$4 sm:$0xff]  }
 0x115   :  { %v207_v8 = vadd.f32 %v206_v7, %v200_v6  ;;  %v2115_v6 = vld [vmem:[#allocation10 + $0x7c] ss:$12 sps:$4 sm:$0xff]   ;;  %v2113_v7 = vld [vmem:[#allocation10 + $0x78] ss:$12 sps:$4 sm:$0xff]  }
 0x118   :  { %v211_v9 = vpop.permute.xlu1 %210 }
 0x119   :  { %v213_v11 = vsel %vm208_vm9, %v211_v9, 0.0  ;;  %v2116_v9 = vld [vmem:[#allocation10 + $0x90] ss:$12 sps:$4 sm:$0xff]  }
 0x11a   :  { %v214_v12 = vadd.f32 %v213_v11, %v207_v8  ;;  %v2118_v8 = vld [vmem:[#allocation10 + $0x94] ss:$12 sps:$4 sm:$0xff]   ;;  %v2582_v11 = vsub.s32 0, %v2579_v10 }
 0x11c   :  { %v221_v15 = vadd.f32 %v220_v13, %v214_v12  ;;  %v276_v12 = vld [vmem:[%s2631_s4] sm:$0x7]  ;;  %v2588_v13 = vsub.s32 1, %v2579_v10 }
 0x11d   :  { %v225_v14 = vpop.permute.xlu1 %224 }
 0x11e   :  { %v227_v16 = vsel %vm222_vm11, %v225_v14, 0.0  ;;  %v281_v14 = vrot.slane %v276_v12, %v2582_v11 }
 0x11f   :  { %v228_v19 = vadd.f32 %v227_v16, %v221_v15  ;;  %v285_v15 = vrot.slane %v276_v12, %v2588_v13 }
 0x122   :  { %v232_v20 = vpop.permute.xlu1 %231 }
 0x123   :  { %v234_v21 = vsel %vm229_vm12, %v232_v20, 0.0 }
 0x124   :  { %v235_v23 = vadd.f32 %v234_v21, %v228_v19 }
 0x126   :  { %v242_v24 = vadd.f32 %v241_v22, %v235_v23 }
 0x128   :  { %v243_v26 = vpack.c.bf16 %v242_v24, %v242_v24 }
 0x12a   :  { %454 = vmatmul.mubr.bf16.vlgmr.msra.gmra.mrb[0].mxu0 %v243_v26  ;;  %1926 = vmatmul.mubr.bf16.vlgmr.msra.gmra.mrb[0].mxu1 %v243_v26 }
 0x12b   :  { %830 = vmatpush1.bf16.msra.mxu0 %v2026_v25  ;;  %1267 = vmatpush1.bf16.msra.mxu1 %v2098_v59  ;;  %v2092_v59 = vld [vmem:[#allocation8 + $0x160] ss:$8 sps:$4 sm:$0xff]  }
 0x12c   :  { %831 = vmatprep.subr.bf16.mxu0 %v2031_v27  ;;  %1268 = vmatprep.subr.bf16.mxu1 %v2103_v61 }
 0x12f   :  { %832 = vmatpush1.bf16.msra.mxu0 %v2029_v28  ;;  %1269 = vmatpush1.bf16.msra.mxu1 %v2101_v62  ;;  %v2095_v62 = vld [vmem:[#allocation8 + $0x170] ss:$8 sps:$4 sm:$0xff]  }
 0x130   :  { %833 = vmatprep.subr.bf16.mxu0 %v2034_v29  ;;  %1270 = vmatprep.subr.bf16.mxu1 %v2106_v63 }
 0x133   :  { %834 = vmatpush1.bf16.msra.mxu0 %v2032_v30  ;;  %1271 = vmatpush1.bf16.msra.mxu1 %v2104_v0  ;;  %v288_v30 = vsub.s32 2, %v2579_v10 }
 0x134   :  { %835 = vmatprep.subr.bf16.mxu0 %v2037_v31  ;;  %1272 = vmatprep.subr.bf16.mxu1 %v2109_v2  ;;  %v2121_v2 = vld [vmem:[#allocation10 + $0xac] ss:$12 sps:$4 sm:$0xff]  }
 0x137   :  { %836 = vmatpush1.bf16.msra.mxu0 %v2035_v32  ;;  %1273 = vmatpush1.bf16.msra.mxu1 %v2107_v3  ;;  %v289_v32 = vrot.slane %v276_v12, %v288_v30  ;;  %v2119_v3 = vld [vmem:[#allocation10 + $0xa8] ss:$12 sps:$4 sm:$0xff]   ;;  %v2133_v12 = vld [vmem:[#allocation10 + $0x10c] ss:$12 sps:$4 sm:$0xff]  }
 0x138   :  { %837 = vmatprep.subr.bf16.mxu0 %v2040_v33  ;;  %1274 = vmatprep.subr.bf16.mxu1 %v2112_v4  ;;  %v2124_v4 = vld [vmem:[#allocation10 + $0xc4] ss:$12 sps:$4 sm:$0xff]  }
 0x13b   :  { %838 = vmatpush1.bf16.msra.mxu0 %v2038_v34  ;;  %1275 = vmatpush1.bf16.msra.mxu1 %v2110_v5  ;;  %v2122_v5 = vld [vmem:[#allocation10 + $0xc0] ss:$12 sps:$4 sm:$0xff]  }
 0x13c   :  { %839 = vmatprep.subr.bf16.mxu0 %v2043_v35  ;;  %1276 = vmatprep.subr.bf16.mxu1 %v2115_v6  ;;  %v2127_v6 = vld [vmem:[#allocation10 + $0xdc] ss:$12 sps:$4 sm:$0xff]  }
 0x13f   :  { %840 = vmatpush1.bf16.msra.mxu0 %v2041_v36  ;;  %1277 = vmatpush1.bf16.msra.mxu1 %v2113_v7  ;;  %v2125_v7 = vld [vmem:[#allocation10 + $0xd8] ss:$12 sps:$4 sm:$0xff]  }
 0x140   :  { %841 = vmatprep.subr.bf16.mxu0 %v2046_v37  ;;  %1278 = vmatprep.subr.bf16.mxu1 %v2118_v8  ;;  %v2130_v8 = vld [vmem:[#allocation10 + $0xf4] ss:$12 sps:$4 sm:$0xff]  }
 0x143   :  { %842 = vmatpush1.bf16.msra.mxu0 %v2044_v38  ;;  %1279 = vmatpush1.bf16.msra.mxu1 %v2116_v9  ;;  %v2128_v9 = vld [vmem:[#allocation10 + $0xf0] ss:$12 sps:$4 sm:$0xff]  }
 0x144   :  { %843 = vmatprep.subr.bf16.mxu0 %v2049_v39  ;;  %1280 = vmatprep.subr.bf16.mxu1 %v2121_v2  ;;  %v2164_v2 = vld [vmem:[#allocation11 + $0x48] sm:$0xff]  }
 0x147   :  { %844 = vmatpush1.bf16.msra.mxu0 %v2047_v40  ;;  %1281 = vmatpush1.bf16.msra.mxu1 %v2119_v3  ;;  %v2165_v3 = vld [vmem:[#allocation11 + $0x8] sm:$0xff]  }
 0x148   :  { %845 = vmatprep.subr.bf16.mxu0 %v2052_v41  ;;  %1282 = vmatprep.subr.bf16.mxu1 %v2124_v4  ;;  %v2166_v4 = vld [vmem:[#allocation11 + $0x50] sm:$0xff]  }
 0x14b   :  { %846 = vmatpush1.bf16.msra.mxu0 %v2050_v42  ;;  %1283 = vmatpush1.bf16.msra.mxu1 %v2122_v5  ;;  %v2167_v5 = vld [vmem:[#allocation11 + $0x10] sm:$0xff]  }
 0x14c   :  { %847 = vmatprep.subr.bf16.mxu0 %v2055_v43  ;;  %1284 = vmatprep.subr.bf16.mxu1 %v2127_v6  ;;  %v2168_v6 = vld [vmem:[#allocation11 + $0x58] sm:$0xff]  }
 0x14f   :  { %848 = vmatpush1.bf16.msra.mxu0 %v2053_v44  ;;  %v2074_v44 = vld [vmem:[#allocation8 + $0x100] ss:$8 sps:$4 sm:$0xff]   ;;  %1285 = vmatpush1.bf16.msra.mxu1 %v2125_v7  ;;  %v2169_v7 = vld [vmem:[#allocation11 + $0x18] sm:$0xff]  }
 0x150   :  { %849 = vmatprep.subr.bf16.mxu0 %v2058_v45  ;;  %1286 = vmatprep.subr.bf16.mxu1 %v2130_v8  ;;  %v2170_v8 = vld [vmem:[#allocation11 + $0x60] sm:$0xff]  }
 0x153   :  { %850 = vmatpush1.bf16.msra.mxu0 %v2056_v47  ;;  %v2079_v47 = vld [vmem:[#allocation8 + $0x114] ss:$8 sps:$4 sm:$0xff]   ;;  %1287 = vmatpush1.bf16.msra.mxu1 %v2128_v9  ;;  %v2171_v9 = vld [vmem:[#allocation11 + $0x20] sm:$0xff]  }
 0x154   :  { %851 = vmatprep.subr.bf16.mxu0 %v2061_v48  ;;  %v2077_v48 = vld [vmem:[#allocation8 + $0x110] ss:$8 sps:$4 sm:$0xff]   ;;  %1288 = vmatprep.subr.bf16.mxu1 %v2133_v12  ;;  %v2172_v12 = vld [vmem:[#allocation11 + $0x68] sm:$0xff]  }
 0x157   :  { %852 = vmatpush1.bf16.msra.mxu0 %v2059_v49  ;;  %v2082_v49 = vld [vmem:[#allocation8 + $0x124] ss:$8 sps:$4 sm:$0xff]  }
 0x158   :  { %853 = vmatprep.subr.bf16.mxu0 %v2064_v50 }
 0x15b   :  { %854 = vmatpush1.bf16.msra.mxu0 %v2062_v51  ;;  %v2080_v51 = vld [vmem:[#allocation8 + $0x120] ss:$8 sps:$4 sm:$0xff]  }
 0x15c   :  { %855 = vmatprep.subr.bf16.mxu0 %v2067_v52  ;;  %v2085_v52 = vld [vmem:[#allocation8 + $0x134] ss:$8 sps:$4 sm:$0xff]  }
 0x15f   :  { %856 = vmatpush1.bf16.msra.mxu0 %v2065_v53 }
 0x160   :  { %857 = vmatprep.subr.bf16.mxu0 %v2070_v54  ;;  %v2083_v54 = vld [vmem:[#allocation8 + $0x130] ss:$8 sps:$4 sm:$0xff]  }
 0x163   :  { %858 = vmatpush1.bf16.msra.mxu0 %v2068_v55  ;;  %v2088_v55 = vld [vmem:[#allocation8 + $0x144] ss:$8 sps:$4 sm:$0xff]  }
 0x164   :  { %859 = vmatprep.subr.bf16.mxu0 %v2073_v56  ;;  %v2086_v56 = vld [vmem:[#allocation8 + $0x140] ss:$8 sps:$4 sm:$0xff]  }
 0x167   :  { %860 = vmatpush1.bf16.msra.mxu0 %v2071_v57  ;;  %v2091_v57 = vld [vmem:[#allocation8 + $0x154] ss:$8 sps:$4 sm:$0xff]  }
 0x168   :  { %870 = vmatprep.subr.bf16.mxu0 %v2076_v58  ;;  %v2089_v58 = vld [vmem:[#allocation8 + $0x150] ss:$8 sps:$4 sm:$0xff]  }
 0x1fd   :  { %v455_v16 = vpop.f32.mrb[0].mxu0  ;;  %v496_v18 = vpop.f32.mrb[0].mxu1 }
 0x1fe   :  { %v456_v19 = vadd.f32 %v455_v16, %v281_v14  ;;  %v457_v20 = vpop.f32.mrb[1].mxu0  ;;  %v1927_v46 = vpop.f32.mrb[1].mxu1  ;;  %v497_v36 = vadd.f32 %v496_v18, %v289_v32  ;;  %v2131_v14 = vld [vmem:[#allocation10 + $0x108] ss:$12 sps:$4 sm:$0xff]   ;;  %v2134_v16 = vld [vmem:[#allocation10 + $0x120] ss:$12 sps:$4 sm:$0xff]  }
 0x1ff   :  { %v458_v21 = vadd.f32 %v457_v20, %v285_v15  ;;  %v459_v22 = vpop.f32.mrb[2].mxu0  ;;  %v499_v23 = vpop.f32.mrb[2].mxu1  ;;  %1289 = vmatpush1.bf16.msra.mxu1 %v2131_v14  ;;  %v2136_v15 = vld [vmem:[#allocation10 + $0x124] ss:$12 sps:$4 sm:$0xff]   ;;  %v2139_v18 = vld [vmem:[#allocation10 + $0x13c] ss:$12 sps:$4 sm:$0xff]  }
 0x200   :  { %v502_v24 = vpack.c.bf16 %v456_v19, %v456_v19  ;;  %v460_v25 = vpop.f32.mrb[3].mxu0  ;;  %v1928_v26 = vpop.f32.mrb[3].mxu1  ;;  %v504_v37 = vpack.c.bf16 %v497_v36, %v497_v36  ;;  %1290 = vmatprep.subr.bf16.mxu1 %v2136_v15  ;;  %v2137_v19 = vld [vmem:[#allocation10 + $0x138] ss:$12 sps:$4 sm:$0xff]   ;;  %v2142_v20 = vld [vmem:[#allocation10 + $0x154] ss:$12 sps:$4 sm:$0xff]  }
 0x201   :  { %v503_v27 = vpack.c.bf16 %v458_v21, %v458_v21  ;;  %v2140_v46 = vld [vmem:[#allocation10 + $0x150] ss:$12 sps:$4 sm:$0xff]   ;;  %v2145_v21 = vld [vmem:[#allocation10 + $0x16c] ss:$12 sps:$4 sm:$0xff]   ;;  %v2143_v22 = vld [vmem:[#allocation10 + $0x168] ss:$12 sps:$4 sm:$0xff]  }
 0x202   :  { %v1715_v28 = vmul.bf16 3216621497, %v502_v24  ;;  %v1717_v38 = vmul.bf16 3216621497, %v504_v37  ;;  %v2146_v23 = vld [vmem:[#allocation10 + $0xc8] ss:$12 sps:$4 sm:$0xff]  }
 0x203   :  { %v1716_v29 = vmul.bf16 3216621497, %v503_v27  ;;  %1291 = vmatpush1.bf16.msra.mxu1 %v2134_v16  ;;  %v2173_v14 = vld [vmem:[#allocation11 + $0x28] sm:$0xff]   ;;  %v2174_v15 = vld [vmem:[#allocation11 + $0x70] sm:$0xff]  }
 0x204   :  { %2186 = vpow.bf16 %v1715_v28  ;;  %1292 = vmatprep.subr.bf16.mxu1 %v2139_v18  ;;  %v2175_v16 = vld [vmem:[#allocation11 + $0x30] sm:$0xff]   ;;  %v2176_v18 = vld [vmem:[#allocation11 + $0x78] sm:$0xff]  }
 0x205   :  { %2188 = vpow.bf16 %v1716_v29 }
 0x207   :  { %1293 = vmatpush1.bf16.msra.mxu1 %v2137_v19  ;;  %v2177_v19 = vld [vmem:[#allocation11 + $0x38] sm:$0xff]  }
 0x208   :  { %1294 = vmatprep.subr.bf16.mxu1 %v2142_v20  ;;  %v2178_v20 = vld [vmem:[#allocation11 + $0x80] sm:$0xff]  }
 0x20b   :  { %1295 = vmatpush1.bf16.msra.mxu1 %v2140_v46  ;;  %v2179_v46 = vld [vmem:[#allocation11 + $0x88] sm:$0xff]  }
 0x20c   :  { %1296 = vmatprep.subr.bf16.mxu1 %v2145_v21  ;;  %v2180_v21 = vld [vmem:[#allocation11 + $0x90] sm:$0xff]  }
 0x20f   :  { %v2187_v31 = vpop.eup %2186  ;;  %1297 = vmatpush1.bf16.msra.mxu1 %v2143_v22  ;;  %v2181_v22 = vld [vmem:[#allocation11 + $0x98] sm:$0xff]  }
 0x210   :  { %v517_v33 = vadd.bf16 1065369472, %v2187_v31  ;;  %v2189_v34 = vpop.eup %2188  ;;  %1856 = vmatprep.subr.bf16.mxu1 %v2146_v23  ;;  %v2182_v23 = vld [vmem:[#allocation11 + $0xa0] sm:$0xff]  }
 0x211   :  { %v518_v35 = vadd.bf16 1065369472, %v2189_v34 }
 0x212   :  { %2190 = vrcp.bf16 %v517_v33 }
 0x213   :  { %2192 = vrcp.bf16 %v518_v35 }
 0x214   :  { %2194 = vpow.bf16 %v1717_v38 }
 0x21d   :  { %v2191_v39 = vpop.eup %2190 }
 0x21e   :  { %v2193_v40 = vpop.eup %2192  ;;  %v521_v41 = vmul.bf16 1065369472, %v2191_v39 }
 0x21f   :  { %v523_v42 = vmul.bf16 1065369472, %v2193_v40  ;;  %v2195_v50 = vpop.eup %2194 }
 0x220   :  { %v526_v45 = vmul.bf16 %v521_v41, %v502_v24  ;;  %v519_v53 = vadd.bf16 1065369472, %v2195_v50  ;;  %v577_v24 = vld [vmem:[%s2633_s6] sm:$0x3] }
 0x221   :  { %v527_v43 = vmul.bf16 %v523_v42, %v503_v27  ;;  %v582_v25 = vrot.slane %v577_v24, %v2582_v11  ;;  %v586_v26 = vrot.slane %v577_v24, %v2588_v13  ;;  %v2148_v50 = vld [vmem:[#allocation10 + $0xe0] ss:$12 sps:$4 sm:$0xff]  }
 0x222   :  { %2196 = vrcp.bf16 %v519_v53  ;;  %v2151_v53 = vld [vmem:[#allocation10 + $0x38] ss:$12 sps:$4 sm:$0xff]   ;;  %v2183_v24 = vld [vmem:[#allocation11 + $0xa8] sm:$0xff]  }
 0x223   :  { %861 = vmatprep.mubr.bf16.mxu0 %v527_v43 }
 0x224   :  { %862 = vmatmul.mubr.bf16.vlgmr.msra.gmra.mrb[4].mxu0 %v526_v45 }
 0x225   :  { %871 = vmatpush1.bf16.msra.mxu0 %v2074_v44  ;;  %902 = vmatprep.mubr.bf16.mxu0 %v2374_v1  ;;  %v2094_v1 = vld [vmem:[#allocation8 + $0x164] ss:$8 sps:$4 sm:$0xff]  }
 0x226   :  { %872 = vmatprep.subr.bf16.mxu0 %v2079_v47 }
 0x229   :  { %873 = vmatpush1.bf16.msra.mxu0 %v2077_v48  ;;  %v2147_v48 = vld [vmem:[#allocation10 + $0x8] ss:$12 sps:$4 sm:$0xff]  }
 0x22a   :  { %874 = vmatprep.subr.bf16.mxu0 %v2082_v49 }
 0x22d   :  { %875 = vmatpush1.bf16.msra.mxu0 %v2080_v51  ;;  %v2197_v61 = vpop.eup %2196  ;;  %v2149_v51 = vld [vmem:[#allocation10 + $0x20] ss:$12 sps:$4 sm:$0xff]  }
 0x22e   :  { %876 = vmatprep.subr.bf16.mxu0 %v2085_v52  ;;  %v525_v63 = vmul.bf16 1065369472, %v2197_v61  ;;  %v2150_v52 = vld [vmem:[#allocation10 + $0xf8] ss:$12 sps:$4 sm:$0xff]   ;;  %v2160_v61 = vld [vmem:[#allocation10 + $0x170] ss:$12 sps:$4 sm:$0xff]  }
 0x230   :  { %v528_v0 = vmul.bf16 %v525_v63, %v504_v37  ;;  %v2162_v63 = vld [vmem:[#allocation11 + $0x40] sm:$0xff]  }
 0x231   :  { %877 = vmatpush1.bf16.msra.mxu0 %v2083_v54  ;;  %v2152_v54 = vld [vmem:[#allocation10 + $0x110] ss:$12 sps:$4 sm:$0xff]  }
 0x232   :  { %878 = vmatprep.subr.bf16.mxu0 %v2088_v55  ;;  %v2153_v55 = vld [vmem:[#allocation10 + $0x50] ss:$12 sps:$4 sm:$0xff]  }
 0x235   :  { %879 = vmatpush1.bf16.msra.mxu0 %v2086_v56  ;;  %v2154_v56 = vld [vmem:[#allocation10 + $0x128] ss:$12 sps:$4 sm:$0xff]  }
 0x236   :  { %880 = vmatprep.subr.bf16.mxu0 %v2091_v57  ;;  %v2155_v57 = vld [vmem:[#allocation10 + $0x68] ss:$12 sps:$4 sm:$0xff]  }
 0x239   :  { %881 = vmatpush1.bf16.msra.mxu0 %v2089_v58  ;;  %v2156_v58 = vld [vmem:[#allocation10 + $0x140] ss:$12 sps:$4 sm:$0xff]  }
 0x23a   :  { %882 = vmatprep.subr.bf16.mxu0 %v2094_v1  ;;  %v2157_v1 = vld [vmem:[#allocation10 + $0x80] ss:$12 sps:$4 sm:$0xff]  }
 0x23d   :  { %883 = vmatpush1.bf16.msra.mxu0 %v2092_v59  ;;  %v2158_v59 = vld [vmem:[#allocation10 + $0x158] ss:$12 sps:$4 sm:$0xff]  }
 0x23e   :  { %884 = vmatprep.subr.bf16.mxu0 %v2097_v60  ;;  %v2159_v60 = vld [vmem:[#allocation10 + $0x98] ss:$12 sps:$4 sm:$0xff]  }
 0x241   :  { %885 = vmatpush1.bf16.msra.mxu0 %v2095_v62  ;;  %v2161_v62 = vld [vmem:[#allocation10 + $0xb0] ss:$12 sps:$4 sm:$0xff]  }
 0x242   :  { %1878 = vmatprep.subr.bf16.mxu0 %v2162_v63 }
 0x244   :  { %903 = vmatmul.mubr.bf16.vlgmr.msra.gmra.mrb[4].mxu0 %v528_v0  ;;  %v2163_v0 = vld [vmem:[#allocation11] sm:$0xff]  }
 0x245   :  { %1879 = vmatpush3.bf16.msra.mxu0 %v2163_v0 }
 0x246   :  { %1880 = vmatprep.subr.bf16.mxu0 %v2164_v2  ;;  %v1819_v2 = vld [vmem:[%s2637_s10] ss:$0 sm:$0xff] }
 0x249   :  { %1881 = vmatpush3.bf16.msra.mxu0 %v2165_v3 }
 0x24a   :  { %1882 = vmatprep.subr.bf16.mxu0 %v2166_v4 }
 0x24d   :  { %1883 = vmatpush3.bf16.msra.mxu0 %v2167_v5 }
 0x24e   :  { %1884 = vmatprep.subr.bf16.mxu0 %v2168_v6 }
 0x251   :  { %1885 = vmatpush3.bf16.msra.mxu0 %v2169_v7 }
 0x252   :  { %1886 = vmatprep.subr.bf16.mxu0 %v2170_v8 }
 0x255   :  { %1887 = vmatpush3.bf16.msra.mxu0 %v2171_v9 }
 0x256   :  { %1888 = vmatprep.subr.bf16.mxu0 %v2172_v12 }
 0x259   :  { %1889 = vmatpush3.bf16.msra.mxu0 %v2173_v14 }
 0x25a   :  { %1890 = vmatprep.subr.bf16.mxu0 %v2174_v15 }
 0x25d   :  { %1891 = vmatpush3.bf16.msra.mxu0 %v2175_v16 }
 0x25e   :  { %1892 = vmatprep.subr.bf16.mxu0 %v2176_v18 }
 0x261   :  { %1893 = vmatpush3.bf16.msra.mxu0 %v2177_v19 }
 0x317   :  { %v904_v27 = vpop.f32.mrb[4].mxu0 }
 0x318   :  { %v1949_v28 = vadd.f32 %v904_v27, %v582_v25  ;;  %v906_v29 = vpop.f32.mrb[5].mxu0  ;;  %v2184_v25 = vld [vmem:[#allocation11 + $0xb0] sm:$0xff]  }
 0x319   :  { %v1950_v31 = vadd.f32 %v906_v29, %v586_v26  ;;  %v908_v32 = vpop.f32.mrb[6].mxu0  ;;  %v2185_v26 = vld [vmem:[#allocation11 + $0xb8] sm:$0xff]   ;;  %v993_v27 = vld [vmem:[%s2635_s8] sm:$0x7] }
 0x31a   :  { %v911_v33 = vpack.c.bf16 %v1949_v28, %v1949_v28  ;;  %v909_v34 = vpop.f32.mrb[7].mxu0  ;;  %v998_v28 = vrot.slane %v993_v27, %v2582_v11  ;;  %v1002_v29 = vrot.slane %v993_v27, %v2588_v13 }
 0x31b   :  { %v912_v35 = vpack.c.bf16 %v1950_v31, %v1950_v31 }
 0x31c   :  { %v1766_v36 = vmul.bf16 3216621497, %v911_v33 }
 0x31d   :  { %v1767_v37 = vmul.bf16 3216621497, %v912_v35 }
 0x31e   :  { %2198 = vpow.bf16 %v1766_v36 }
 0x31f   :  { %2200 = vpow.bf16 %v1767_v37 }
 0x329   :  { %v2199_v38 = vpop.eup %2198 }
 0x32a   :  { %v2201_v39 = vpop.eup %2200  ;;  %v921_v40 = vadd.bf16 1065369472, %v2199_v38 }
 0x32b   :  { %v922_v41 = vadd.bf16 1065369472, %v2201_v39 }
 0x32c   :  { %2202 = vrcp.bf16 %v921_v40 }
 0x32d   :  { %2204 = vrcp.bf16 %v922_v41 }
 0x337   :  { %v2203_v42 = vpop.eup %2202 }
 0x338   :  { %v2205_v43 = vpop.eup %2204  ;;  %v924_v44 = vmul.bf16 1065369472, %v2203_v42 }
 0x339   :  { %v926_v45 = vmul.bf16 1065369472, %v2205_v43 }
 0x33a   :  { %v927_v49 = vmul.bf16 %v924_v44, %v911_v33  ;;  %v1006_v44 = vrot.slane %v993_v27, %v288_v30 }
 0x33b   :  { %v928_v47 = vmul.bf16 %v926_v45, %v912_v35 }
 0x33d   :  { %1298 = vmatprep.mubr.bf16.mxu1 %v928_v47 }
 0x33e   :  { %1299 = vmatmul.mubr.bf16.vlgmr.msra.gmra.mrb[4].mxu1 %v927_v49 }
 0x33f   :  { %1857 = vmatpush3.bf16.msra.mxu1 %v2147_v48  ;;  %1339 = vmatprep.mubr.bf16.mxu1 %v928_v47 }
 0x340   :  { %1858 = vmatprep.subr.bf16.mxu1 %v2148_v50 }
 0x343   :  { %1859 = vmatpush3.bf16.msra.mxu1 %v2149_v51 }
 0x344   :  { %1860 = vmatprep.subr.bf16.mxu1 %v2150_v52 }
 0x347   :  { %1861 = vmatpush3.bf16.msra.mxu1 %v2151_v53 }
 0x348   :  { %1862 = vmatprep.subr.bf16.mxu1 %v2152_v54 }
 0x34b   :  { %1863 = vmatpush3.bf16.msra.mxu1 %v2153_v55 }
 0x34c   :  { %1864 = vmatprep.subr.bf16.mxu1 %v2154_v56 }
 0x34f   :  { %1865 = vmatpush3.bf16.msra.mxu1 %v2155_v57 }
 0x350   :  { %1866 = vmatprep.subr.bf16.mxu1 %v2156_v58 }
 0x353   :  { %1867 = vmatpush3.bf16.msra.mxu1 %v2157_v1 }
 0x354   :  { %1868 = vmatprep.subr.bf16.mxu1 %v2158_v59 }
 0x357   :  { %1869 = vmatpush3.bf16.msra.mxu1 %v2159_v60 }
 0x358   :  { %1870 = vmatprep.subr.bf16.mxu1 %v2160_v61 }
 0x35b   :  { %1871 = vmatpush3.bf16.msra.mxu1 %v2161_v62 }
 0x35c   :  { %1929 = vmatprep.subr.bf16.mxu1 %v2379_v17 }
 0x35e   :  { %1340 = vmatmul.mubr.bf16.vlgmr.msra.gmra.mrb[8].mxu1 %v927_v49 }
 0x35f   :  { %1945 = vmatprep.mubr.msk.bf16.mxu1 %vm2383_vm0, %v2379_v17  ;;  %1930 = vmatpush3.bf16.msra.mxu1 %v2178_v20  ;;  %v1845_v20 = vld [vmem:[%s2638_s11] ss:$0 sm:$0xff] }
 0x360   :  { %1931 = vmatprep.subr.bf16.mxu1 %v2379_v17 }
 0x363   :  { %1932 = vmatpush3.bf16.msra.mxu1 %v2179_v46 }
 0x364   :  { %1933 = vmatprep.subr.bf16.mxu1 %v2379_v17 }
 0x367   :  { %1934 = vmatpush3.bf16.msra.mxu1 %v2180_v21 }
 0x368   :  { %1935 = vmatprep.subr.bf16.mxu1 %v2379_v17 }
 0x36b   :  { %1936 = vmatpush3.bf16.msra.mxu1 %v2181_v22  ;;  %v1846_v22 = vld [vmem:[#allocation2] ss:$0 sm:$0xff] }
 0x36c   :  { %1937 = vmatprep.subr.bf16.mxu1 %v2379_v17 }
 0x36f   :  { %1938 = vmatpush3.bf16.msra.mxu1 %v2182_v23 }
 0x370   :  { %1939 = vmatprep.subr.bf16.mxu1 %v2379_v17 }
 0x373   :  { %1940 = vmatpush3.bf16.msra.mxu1 %v2183_v24 }
 0x374   :  { %1941 = vmatprep.subr.bf16.mxu1 %v2379_v17 }
 0x377   :  { %1942 = vmatpush3.bf16.msra.mxu1 %v2184_v25 }
 0x378   :  { %1943 = vmatprep.subr.bf16.mxu1 %v2379_v17 }
 0x37b   :  { %1944 = vmatpush3.bf16.msra.mxu1 %v2185_v26 }
 0x411   :  { %v1300_v31 = vpop.f32.mrb[4].mxu1 }
 0x412   :  { %v1301_v32 = vadd.f32 %v1300_v31, %v998_v28  ;;  %v1302_v33 = vpop.f32.mrb[5].mxu1 }
 0x413   :  { %v1303_v34 = vadd.f32 %v1302_v33, %v1002_v29  ;;  %v1304_v35 = vpop.f32.mrb[6].mxu1 }
 0x414   :  { %v1347_v36 = vpack.c.bf16 %v1301_v32, %v1301_v32  ;;  %v1305_v37 = vpop.f32.mrb[7].mxu1 }
 0x415   :  { %v1348_v38 = vpack.c.bf16 %v1303_v34, %v1303_v34 }
 0x416   :  { %v1816_v39 = vmul.bf16 3216621497, %v1347_v36 }
 0x417   :  { %v1817_v17 = vmul.bf16 3216621497, %v1348_v38 }
 0x418   :  { %2206 = vpow.bf16 %v1816_v39 }
 0x419   :  { %2208 = vpow.bf16 %v1817_v17 }
 0x423   :  { %v2207_v40 = vpop.eup %2206 }
 0x424   :  { %v2209_v41 = vpop.eup %2208  ;;  %v1362_v42 = vadd.bf16 1065369472, %v2207_v40 }
 0x425   :  { %v1363_v43 = vadd.bf16 1065369472, %v2209_v41 }
 0x426   :  { %2210 = vrcp.bf16 %v1362_v42 }
 0x427   :  { %2212 = vrcp.bf16 %v1363_v43 }
 0x431   :  { %v2211_v11 = vpop.eup %2210  ;;  %v1872_v13 = vpop.f32.mrb[8].mxu1 }
 0x432   :  { %v2213_v45 = vpop.eup %2212  ;;  %v1366_v47 = vmul.bf16 1065369472, %v2211_v11  ;;  %v1873_v48 = vpop.f32.mrb[9].mxu1 }
 0x433   :  { %v1368_v49 = vmul.bf16 1065369472, %v2213_v45  ;;  %v1874_v50 = vadd.f32 %v1873_v48, %v1872_v13  ;;  %v1875_v51 = vpop.f32.mrb[10].mxu1 }
 0x434   :  { %v1876_v52 = vpop.f32.mrb[11].mxu1  ;;  %v1371_v55 = vmul.bf16 %v1366_v47, %v1347_v36 }
 0x435   :  { %v1372_v53 = vmul.bf16 %v1368_v49, %v1348_v38  ;;  %v1342_v54 = vadd.f32 %v1874_v50, %v1006_v44 }
 0x437   :  { %v1349_v56 = vpack.c.bf16 %v1342_v54, %v1342_v54  ;;  %1605 = vmatprep.mubr.bf16.mxu0 %v1372_v53 }
 0x438   :  { %1606 = vmatmul.mubr.bf16.vlgmr.msra.gmra.mrb[8].mxu0 %v1371_v55 }
 0x439   :  { %v1818_v57 = vmul.bf16 3216621497, %v1349_v56 }
 0x43b   :  { %2214 = vpow.bf16 %v1818_v57 }
 0x446   :  { %v2215_v58 = vpop.eup %2214 }
 0x447   :  { %v1364_v1 = vadd.bf16 1065369472, %v2215_v58 }
 0x449   :  { %2216 = vrcp.bf16 %v1364_v1 }
 0x454   :  { %v2217_v10 = vpop.eup %2216 }
 0x455   :  { %v1370_v30 = vmul.bf16 1065369472, %v2217_v10 }
 0x457   :  { %v1373_v59 = vmul.bf16 %v1370_v30, %v1349_v56 }
 0x459   :  { %1946 = vmatmul.mubr.bf16.vlgmr.msra.gmra.mrb[12].mxu1 %v1373_v59 }
 0x50b   :  { %v1894_v60 = vpop.f32.mrb[8].mxu0 }
 0x50c   :  { %v1895_v61 = vpop.f32.mrb[9].mxu0 }
 0x50d   :  { %v1896_v62 = vadd.f32 %v1895_v61, %v1894_v60  ;;  %v1897_v63 = vpop.f32.mrb[10].mxu0 }
 0x50e   :  { %v1898_v0 = vpop.f32.mrb[11].mxu0 }
 0x50f   :  { %v1608_v3 = vadd.f32 %v1896_v62, %v1819_v2 }
 0x52c   :  { %v1647_v4 = vpop.f32.mrb[12].mxu1 }
 0x52d   :  { %v1648_v5 = vadd.f32 %v1647_v4, %v1608_v3  ;;  %v1947_v6 = vpop.f32.mrb[13].mxu1 }
 0x52e   :  { %v1650_v7 = vpop.f32.mrb[14].mxu1 }
 0x52f   :  { %v1653_v8 = vpack.c.bf16 %v1648_v5, %v1648_v5  ;;  %v1948_v9 = vpop.f32.mrb[15].mxu1 }
 0x531   :  { %v1844_v12 = vmul.bf16 3216621497, %v1653_v8 }
 0x533   :  { %2218 = vpow.bf16 %v1844_v12 }
 0x53e   :  { %v2219_v14 = vpop.eup %2218 }
 0x53f   :  { %v1658_v15 = vadd.bf16 1065369472, %v2219_v14 }
 0x541   :  { %2220 = vrcp.bf16 %v1658_v15 }
 0x54c   :  { %v2221_v16 = vpop.eup %2220 }
 0x54d   :  { %v1660_v18 = vmul.bf16 1065369472, %v2221_v16 }
 0x54f   :  { %v1661_v19 = vmul.bf16 %v1660_v18, %v1653_v8 }
 0x551   :  { %v1662_v46 = vunpack.c.l.bf16 %v1661_v19 }
 0x553   :  { %v1670_v21 = vmul.f32 %v1845_v20, %v1662_v46 }
 0x555   :  { %1671 = vadd.xlane.f32.xlu1 %v1670_v21 }
 0x5e2   :  { %v1672_v23 = vpop.xlane.xlu1 %1671 }
 0x5e3   :  { %v1680_v24 = vadd.f32 %v1846_v22, %v1672_v23 }
 0x5e5   :  { %1682 = vst.msk [vmem:[%s2640_s13] sm:$0xff] %vm1681_vm14, %v1680_v24 }
 0x5e6   :  { %1687 = vsyncpa [#allocation4], 1 }
 0x5e7   :  { %1688 = vsyncpa [#allocation6], 1 }
 0x5e8   :  { %1689 = vsyncpa [#allocation9], 1 }
 0x5e9   :  { %1690 = vsyncpa [#allocation12], 1 }

</bundles_post_ra>
